<compile_context>
chip_gen: v6e
topology: v6e:2x2x1
jax: 0.10.0
libtpu: 0.0.40
codegen_flags: <defaults>
</compile_context>

<pallas_src>
import math
from functools import partial

import jax
import jax.numpy as jnp
from jax.experimental import pallas as pl
from jax.experimental.pallas import tpu as pltpu


# ---------------------------------------------------------------------------
# Kernel
# ---------------------------------------------------------------------------
def _flow_kernel(o_ref, z_ref, w1_ref, b1_ref, wst_ref, bst_ref,
                 y_ref, lp_ref, *, num_layers, dimension):
    L, D = num_layers, dimension

    o = o_ref[...].astype(jnp.float32)       # [TN, C]
    z = z_ref[...].astype(jnp.float32)       # [TN, D]

    # initial_dist.log_prob(z): standard Normal, summed over the D axis.
    lp = (-0.5 * jnp.sum(z * z, axis=-1, keepdims=True)
          - 0.5 * D * math.log(2.0 * math.pi))               # [TN, 1]

    # One conditioner matmul for all layers: [TN, C] @ [C, L*H].
    h_all = jnp.tanh(
        jnp.dot(o, w1_ref[...], preferred_element_type=jnp.float32)
        + b1_ref[...])                                        # [TN, L*H]

    # One block-diagonal projection matmul for all layers' s and t:
    # [TN, L*H] @ [L*H, 2*L*D].  Columns [0, L*D) hold s (layer-major),
    # columns [L*D, 2*L*D) hold t.
    st = (jnp.dot(h_all, wst_ref[...], preferred_element_type=jnp.float32)
          + bst_ref[...])                                     # [TN, 2*L*D]
    s_all = st[:, :L * D]                                     # [TN, L*D]
    t_all = st[:, L * D:]                                     # [TN, L*D]

    # log|det J| of the whole stack = sum of every s entry — one reduction.
    lp = lp - jnp.sum(s_all, axis=-1, keepdims=True)

    # Single batched exp on the lane-dense [TN, L*D] block (one EUP push).
    es_all = jnp.exp(s_all)                                   # [TN, L*D]

    # Sequential elementwise affine updates (L is small; statically unrolled).
    for k in range(L):
        z = z * es_all[:, k * D:(k + 1) * D] + t_all[:, k * D:(k + 1) * D]

    # output_layer: SupportTransformLayer('r') -> identity, zero log-det-jac.
    y_ref[...] = z.astype(y_ref.dtype)
    lp_ref[...] = lp


# ---------------------------------------------------------------------------
# Host-side parameter packing (per-layer -> batched / block-diagonal).
# Call ONCE and reuse; this is deliberately outside the per-call path.
# ---------------------------------------------------------------------------
def pack_params(params):
    w1, b1, ws, bs, wt, bt = params
    L, C, H = w1.shape
    D = ws.shape[2]

    # conditioner weights for all layers side by side: [C, L*H]
    w1_all = jnp.transpose(w1, (1, 0, 2)).reshape(C, L * H)
    b1_all = b1.reshape(1, L * H)

    # block-diagonal projection: rows k*H:(k+1)*H act only on layer k's h,
    # s columns first, then t columns (both layer-major).
    wst = jnp.zeros((L * H, 2 * L * D), jnp.float32)
    for k in range(L):
        wst = wst.at[k * H:(k + 1) * H, k * D:(k + 1) * D].set(ws[k])
        wst = wst.at[k * H:(k + 1) * H,
                     L * D + k * D:L * D + (k + 1) * D].set(wt[k])
    bst = jnp.concatenate([bs.reshape(1, L * D), bt.reshape(1, L * D)],
                          axis=-1)
    return (jax.device_put(w1_all), jax.device_put(b1_all),
            jax.device_put(wst), jax.device_put(bst))


def _round_up(x, m):
    return ((x + m - 1) // m) * m


# ---------------------------------------------------------------------------
# Wrapper
# ---------------------------------------------------------------------------
def conditional_normalizing_flow_forward(o, z, packed_params, *, tile_n=None):
    """Forward pass with pre-packed params.

    Returns (y, log_prob) with y: [N, D], log_prob: [N].
    """
    w1_all, b1_all, wst, bst = packed_params
    N, C = o.shape
    D = z.shape[1]
    L = bst.shape[-1] // (2 * D)
    H = w1_all.shape[1] // L

    if tile_n is None:
        if N > 1024:
            tile_n = 512            # ~85%+ of HBM roofline, many grid steps
        else:
            # >= 2 grid steps so both v7x TensorCores get work (free on
            # v5e/v6e which have a single TC).
            tile_n = max(8, _round_up(pl.cdiv(N, 2), 8))

    # Conservative VMEM cap (double-buffered input/output tiles plus the
    # [TN, L*H] and [TN, 2*L*D] intermediates); relevant for v7x (64 MiB
    # physical / ~32 MiB scoped VMEM).
    bytes_per_row = 4 * (2 * (C + D + D + 1) + (L * H) + (2 * L * D))
    vmem_budget = 8 << 20
    while tile_n > 8 and tile_n * bytes_per_row > vmem_budget:
        tile_n //= 2
    tile_n = _round_up(tile_n, 8)

    grid_n = pl.cdiv(N, tile_n)
    n_pad = grid_n * tile_n
    if n_pad != N:
        o = jnp.pad(o, ((0, n_pad - N), (0, 0)))
        z = jnp.pad(z, ((0, n_pad - N), (0, 0)))

    kernel = partial(_flow_kernel, num_layers=L, dimension=D)
    full = lambda i: (0, 0)

    y, lp = pl.pallas_call(
        kernel,
        out_shape=(jax.ShapeDtypeStruct((n_pad, D), jnp.float32),
                   jax.ShapeDtypeStruct((n_pad, 1), jnp.float32)),
        grid_spec=pltpu.PrefetchScalarGridSpec(
            num_scalar_prefetch=0,
            grid=(grid_n,),
            in_specs=[
                pl.BlockSpec((tile_n, C), lambda i: (i, 0)),     # o
                pl.BlockSpec((tile_n, D), lambda i: (i, 0)),     # z
                pl.BlockSpec((C, L * H), full),                  # W1_all
                pl.BlockSpec((1, L * H), full),                  # b1_all
                pl.BlockSpec((L * H, 2 * L * D), full),          # W_blockdiag
                pl.BlockSpec((1, 2 * L * D), full),              # bst
            ],
            out_specs=[
                pl.BlockSpec((tile_n, D), lambda i: (i, 0)),     # y
                pl.BlockSpec((tile_n, 1), lambda i: (i, 0)),     # log_prob
            ],
        ),
        compiler_params=pltpu.CompilerParams(
            dimension_semantics=("parallel",)),
    )(o, z, w1_all, b1_all, wst, bst)

    return y[:N], lp[:N, 0]


# ---------------------------------------------------------------------------
# Deterministic parameter init + reference
# ---------------------------------------------------------------------------
def init_params(key, num_layers, cond_dim, dimension, hidden):
    ks = jax.random.split(key, 6)
    w1 = 0.3 * jax.random.normal(ks[0], (num_layers, cond_dim, hidden), jnp.float32)
    b1 = 0.1 * jax.random.normal(ks[1], (num_layers, 1, hidden), jnp.float32)
    ws = 0.3 * jax.random.normal(ks[2], (num_layers, hidden, dimension), jnp.float32)
    bs = 0.1 * jax.random.normal(ks[3], (num_layers, 1, dimension), jnp.float32)
    wt = 0.3 * jax.random.normal(ks[4], (num_layers, hidden, dimension), jnp.float32)
    bt = 0.1 * jax.random.normal(ks[5], (num_layers, 1, dimension), jnp.float32)
    return w1, b1, ws, bs, wt, bt


def reference_forward(o, z, params):
    w1, b1, ws, bs, wt, bt = params
    D = z.shape[1]
    lp = -0.5 * jnp.sum(z * z, axis=-1) - 0.5 * D * math.log(2.0 * math.pi)
    for k in range(w1.shape[0]):
        h = jnp.tanh(o @ w1[k] + b1[k])
        s = h @ ws[k] + bs[k]
        t = h @ wt[k] + bt[k]
        z = z * jnp.exp(s) + t
        lp = lp - jnp.sum(s, axis=-1)
    return z, lp


# ---------------------------------------------------------------------------
if __name__ == "__main__":
    NUM_LAYERS = 5      # num_layers
    COND_DIM = 8        # conditioning features of `o`
    DIMENSION = 4       # flow dimension
    HIDDEN = 32         # hidden width of conditioner MLP
    N = 250             # num_samples (deliberately not a power of two: exercises
                        # the cdiv-grid + padding path)

    key = jax.random.PRNGKey(0)
    k_o, k_z, k_p = jax.random.split(key, 3)

    o = jax.random.normal(k_o, (N, COND_DIM), jnp.float32)
    z = jax.random.normal(k_z, (N, DIMENSION), jnp.float32)   # initial_dist samples
    params = init_params(k_p, NUM_LAYERS, COND_DIM, DIMENSION, HIDDEN)

    packed = pack_params(params)          # packed ONCE, reused across calls
    y, log_prob = conditional_normalizing_flow_forward(o, z, packed)
    jax.block_until_ready((y, log_prob))

    y_ref, lp_ref = reference_forward(o, z, params)
    assert y.shape == (N, DIMENSION) and log_prob.shape == (N,)
    assert jnp.allclose(y, y_ref, atol=1e-4, rtol=1e-4), "y mismatch"
    assert jnp.allclose(log_prob, lp_ref, atol=1e-4, rtol=1e-4), "log_prob mismatch"

    print("KERNEL_OK")
</pallas_src>

<mosaic_0001>
module attributes {stable_mosaic.version = 11 : i64} {
  func.func @_flow_kernel(%arg0: i32, %arg1: memref<128x8xf32, #tpu.memory_space<vmem>>, %arg2: memref<128x4xf32, #tpu.memory_space<vmem>>, %arg3: memref<8x160xf32, #tpu.memory_space<vmem>>, %arg4: memref<1x160xf32, #tpu.memory_space<vmem>>, %arg5: memref<160x40xf32, #tpu.memory_space<vmem>>, %arg6: memref<1x40xf32, #tpu.memory_space<vmem>>, %arg7: memref<128x4xf32, #tpu.memory_space<vmem>>, %arg8: memref<128x1xf32, #tpu.memory_space<vmem>>) attributes {dimension_semantics = [#tpu.dimension_semantics<parallel>], iteration_bounds = array<i64: 2>, scalar_prefetch = 0 : i64, scratch_operands = 0 : i64, tpu.core_type = #tpu.core_type<tc>, window_params = [{transform_indices = @transform_0, window_bounds = array<i64: 128, 8>}, {transform_indices = @transform_1, window_bounds = array<i64: 128, 4>}, {pipeline_mode = #tpu.pipeline_mode<synchronous>, transform_indices = @transform_2, window_bounds = array<i64: 8, 160>}, {pipeline_mode = #tpu.pipeline_mode<synchronous>, transform_indices = @transform_3, window_bounds = array<i64: 1, 160>}, {pipeline_mode = #tpu.pipeline_mode<synchronous>, transform_indices = @transform_4, window_bounds = array<i64: 160, 40>}, {pipeline_mode = #tpu.pipeline_mode<synchronous>, transform_indices = @transform_5, window_bounds = array<i64: 1, 40>}, {transform_indices = @transform_6, window_bounds = array<i64: 128, 4>}, {transform_indices = @transform_7, window_bounds = array<i64: 128, 1>}]} {
    %c0 = arith.constant 0 : index
    %c0_0 = arith.constant 0 : index
    %0 = vector.load %arg1[%c0, %c0_0] : memref<128x8xf32, #tpu.memory_space<vmem>>, vector<128x8xf32>
    %c0_1 = arith.constant 0 : index
    %c0_2 = arith.constant 0 : index
    %1 = vector.load %arg2[%c0_1, %c0_2] : memref<128x4xf32, #tpu.memory_space<vmem>>, vector<128x4xf32>
    %2 = arith.mulf %1, %1 : vector<128x4xf32>
    %cst = arith.constant dense<0.000000e+00> : vector<128xf32>
    %3 = vector.multi_reduction <add>, %2, %cst [1] : vector<128x4xf32> to vector<128xf32>
    %4 = vector.shape_cast %3 : vector<128xf32> to vector<128x1xf32>
    %cst_3 = arith.constant -5.000000e-01 : f32
    %5 = vector.broadcast %cst_3 : f32 to vector<128x1xf32>
    %6 = arith.mulf %5, %4 : vector<128x1xf32>
    %cst_4 = arith.constant 3.67575407 : f32
    %7 = vector.broadcast %cst_4 : f32 to vector<128x1xf32>
    %8 = arith.subf %6, %7 : vector<128x1xf32>
    %c0_5 = arith.constant 0 : index
    %c0_6 = arith.constant 0 : index
    %9 = vector.load %arg3[%c0_5, %c0_6] : memref<8x160xf32, #tpu.memory_space<vmem>>, vector<8x160xf32>
    %cst_7 = arith.constant dense<0.000000e+00> : vector<128x160xf32>
    %10 = tpu.matmul %0, %9, %cst_7 {dimension_numbers = #tpu.dot_dimension_numbers<[1], [0], [0], [1], [0, 0, 1, 1], [], []>} : vector<128x8xf32>, vector<8x160xf32>, vector<128x160xf32> -> vector<128x160xf32>
    %c0_8 = arith.constant 0 : index
    %c0_9 = arith.constant 0 : index
    %11 = vector.load %arg4[%c0_8, %c0_9] : memref<1x160xf32, #tpu.memory_space<vmem>>, vector<1x160xf32>
    %12 = vector.broadcast %11 : vector<1x160xf32> to vector<128x160xf32>
    %13 = arith.addf %10, %12 : vector<128x160xf32>
    %14 = math.tanh %13 : vector<128x160xf32>
    %c0_10 = arith.constant 0 : index
    %c0_11 = arith.constant 0 : index
    %15 = vector.load %arg5[%c0_10, %c0_11] : memref<160x40xf32, #tpu.memory_space<vmem>>, vector<160x40xf32>
    %cst_12 = arith.constant dense<0.000000e+00> : vector<128x40xf32>
    %16 = tpu.matmul %14, %15, %cst_12 {dimension_numbers = #tpu.dot_dimension_numbers<[1], [0], [0], [1], [0, 0, 1, 1], [], []>} : vector<128x160xf32>, vector<160x40xf32>, vector<128x40xf32> -> vector<128x40xf32>
    %c0_13 = arith.constant 0 : index
    %c0_14 = arith.constant 0 : index
    %17 = vector.load %arg6[%c0_13, %c0_14] : memref<1x40xf32, #tpu.memory_space<vmem>>, vector<1x40xf32>
    %18 = vector.broadcast %17 : vector<1x40xf32> to vector<128x40xf32>
    %19 = arith.addf %16, %18 : vector<128x40xf32>
    %20 = vector.extract_strided_slice %19 {offsets = [0, 0], sizes = [128, 20], strides = [1, 1]} : vector<128x40xf32> to vector<128x20xf32>
    %21 = vector.extract_strided_slice %19 {offsets = [0, 20], sizes = [128, 20], strides = [1, 1]} : vector<128x40xf32> to vector<128x20xf32>
    %cst_15 = arith.constant dense<0.000000e+00> : vector<128xf32>
    %22 = vector.multi_reduction <add>, %20, %cst_15 [1] : vector<128x20xf32> to vector<128xf32>
    %23 = vector.shape_cast %22 : vector<128xf32> to vector<128x1xf32>
    %24 = arith.subf %8, %23 : vector<128x1xf32>
    %25 = math.exp %20 : vector<128x20xf32>
    %26 = vector.extract_strided_slice %25 {offsets = [0, 0], sizes = [128, 4], strides = [1, 1]} : vector<128x20xf32> to vector<128x4xf32>
    %27 = arith.mulf %1, %26 : vector<128x4xf32>
    %28 = vector.extract_strided_slice %21 {offsets = [0, 0], sizes = [128, 4], strides = [1, 1]} : vector<128x20xf32> to vector<128x4xf32>
    %29 = arith.addf %27, %28 : vector<128x4xf32>
    %30 = vector.extract_strided_slice %25 {offsets = [0, 4], sizes = [128, 4], strides = [1, 1]} : vector<128x20xf32> to vector<128x4xf32>
    %31 = arith.mulf %29, %30 : vector<128x4xf32>
    %32 = vector.extract_strided_slice %21 {offsets = [0, 4], sizes = [128, 4], strides = [1, 1]} : vector<128x20xf32> to vector<128x4xf32>
    %33 = arith.addf %31, %32 : vector<128x4xf32>
    %34 = vector.extract_strided_slice %25 {offsets = [0, 8], sizes = [128, 4], strides = [1, 1]} : vector<128x20xf32> to vector<128x4xf32>
    %35 = arith.mulf %33, %34 : vector<128x4xf32>
    %36 = vector.extract_strided_slice %21 {offsets = [0, 8], sizes = [128, 4], strides = [1, 1]} : vector<128x20xf32> to vector<128x4xf32>
    %37 = arith.addf %35, %36 : vector<128x4xf32>
    %38 = vector.extract_strided_slice %25 {offsets = [0, 12], sizes = [128, 4], strides = [1, 1]} : vector<128x20xf32> to vector<128x4xf32>
    %39 = arith.mulf %37, %38 : vector<128x4xf32>
    %40 = vector.extract_strided_slice %21 {offsets = [0, 12], sizes = [128, 4], strides = [1, 1]} : vector<128x20xf32> to vector<128x4xf32>
    %41 = arith.addf %39, %40 : vector<128x4xf32>
    %42 = vector.extract_strided_slice %25 {offsets = [0, 16], sizes = [128, 4], strides = [1, 1]} : vector<128x20xf32> to vector<128x4xf32>
    %43 = arith.mulf %41, %42 : vector<128x4xf32>
    %44 = vector.extract_strided_slice %21 {offsets = [0, 16], sizes = [128, 4], strides = [1, 1]} : vector<128x20xf32> to vector<128x4xf32>
    %45 = arith.addf %43, %44 : vector<128x4xf32>
    %c0_16 = arith.constant 0 : index
    %c0_17 = arith.constant 0 : index
    %46 = vector.load %arg7[%c0_16, %c0_17] : memref<128x4xf32, #tpu.memory_space<vmem>>, vector<128x4xf32>
    tpu.vector_store %arg7[%c0_16, %c0_17], %45 {strides = array<i32>} : memref<128x4xf32, #tpu.memory_space<vmem>>, vector<128x4xf32>,
    %c0_18 = arith.constant 0 : index
    %c0_19 = arith.constant 0 : index
    %47 = vector.load %arg8[%c0_18, %c0_19] : memref<128x1xf32, #tpu.memory_space<vmem>>, vector<128x1xf32>
    tpu.vector_store %arg8[%c0_18, %c0_19], %24 {strides = array<i32>} : memref<128x1xf32, #tpu.memory_space<vmem>>, vector<128x1xf32>,
    return
  }
  func.func @transform_0(%arg0: i32) -> (i32, i32) {
    %c0_i32 = arith.constant 0 : i32
    %c0_i32_0 = arith.constant 0 : i32
    return %arg0, %c0_i32 : i32, i32
  }
  func.func @transform_1(%arg0: i32) -> (i32, i32) {
    %c0_i32 = arith.constant 0 : i32
    %c0_i32_0 = arith.constant 0 : i32
    return %arg0, %c0_i32 : i32, i32
  }
  func.func @transform_2(%arg0: i32) -> (i32, i32) {
    %c0_i32 = arith.constant 0 : i32
    %c0_i32_0 = arith.constant 0 : i32
    %c0_i32_1 = arith.constant 0 : i32
    return %c0_i32, %c0_i32_0 : i32, i32
  }
  func.func @transform_3(%arg0: i32) -> (i32, i32) {
    %c0_i32 = arith.constant 0 : i32
    %c0_i32_0 = arith.constant 0 : i32
    %c0_i32_1 = arith.constant 0 : i32
    return %c0_i32, %c0_i32_0 : i32, i32
  }
  func.func @transform_4(%arg0: i32) -> (i32, i32) {
    %c0_i32 = arith.constant 0 : i32
    %c0_i32_0 = arith.constant 0 : i32
    %c0_i32_1 = arith.constant 0 : i32
    return %c0_i32, %c0_i32_0 : i32, i32
  }
  func.func @transform_5(%arg0: i32) -> (i32, i32) {
    %c0_i32 = arith.constant 0 : i32
    %c0_i32_0 = arith.constant 0 : i32
    %c0_i32_1 = arith.constant 0 : i32
    return %c0_i32, %c0_i32_0 : i32, i32
  }
  func.func @transform_6(%arg0: i32) -> (i32, i32) {
    %c0_i32 = arith.constant 0 : i32
    %c0_i32_0 = arith.constant 0 : i32
    return %arg0, %c0_i32 : i32, i32
  }
  func.func @transform_7(%arg0: i32) -> (i32, i32) {
    %c0_i32 = arith.constant 0 : i32
    %c0_i32_0 = arith.constant 0 : i32
    return %arg0, %c0_i32 : i32, i32
  }
}

</mosaic_0001>

<bundles_post_ra>
// kernel: tpu_custom_call.1
= control target key start
LH: loop header
LB: loop body
LE: loop exit
PB: predicated region body
PF: predicated region fallthrough
CT: control target
= control target key end

     0   :  { %s2069_s24 = smov 0   ;;  %s3188_s0 = inlined_call_operand.vmem [shape: f32[256,8], index: 0, kind: input, shape index: {}]   ;;  %s3189_s1 = inlined_call_operand.vmem [shape: f32[256,4], index: 1, kind: input, shape index: {}]   ;;  %s3190_s2 = inlined_call_operand.vmem [shape: f32[8,160], index: 2, kind: input, shape index: {}]   ;;  %s3191_s3 = inlined_call_operand.vmem [shape: f32[1,160], index: 3, kind: input, shape index: {}]   ;;  %s3192_s4 = inlined_call_operand.vmem [shape: f32[160,40], index: 4, kind: input, shape index: {}]   ;;  %s3193_s5 = inlined_call_operand.vmem [shape: f32[1,40], index: 5, kind: input, shape index: {}]   ;;  %s3194_s6 = inlined_call_operand.vmem [shape: f32[256,4], index: 6, kind: output, shape index: {0}]   ;;  %s3195_s7 = inlined_call_operand.vmem [shape: f32[256,1], index: 7, kind: output, shape index: {1}]  }
   0x1 LB: > { %s1780_s25 = sadd.s32 4294967295, %s2017_s24   ;;  %p1784_p0 = scmp.ge.s32.totalorder %s2017_s24, 1  ;;  %s2017_s24 = sphi %s2069_s24, %s18_s24  }
   0x2   : > { %p252_p1 = scmp.lt.s32.totalorder %s2017_s24, 3 }
   0x4   : > { %p253_p2 = pnand %p1784_p0, %p252_p1 }
   0x6   : > { %256 = sbr.rel (%p253_p2) target bundleno = 1238 (0x4d6), region = 44 }
   0xb   : > { %v448_v0 = vld [vmem:[%s3190_s2 + $0x8] sm:$0xff]  ;;  %v447_v1 = vld [vmem:[%s3190_s2] sm:$0xff]  ;;  %s1785_s30 = sshll.u32 %s1780_s25, 4  ;;  %v2019_v2 = vmov 0.0   ;;  %v718_v3 = vld [vmem:[%s3192_s4 + $0x78] sm:$0xff]  ;;  %vm461_vm0 = vcmask 64512  }
   0xc   : > { %540 = vmatprep.subr.mxu0 %v448_v0  ;;  %574 = vmatprep.mubr.f32.mxu0 %v2019_v2  ;;  %p295_p3 = scmp.lt.s32.totalorder %s1785_s30, 31  ;;  %v717_v4 = vld [vmem:[%s3192_s4 + $0x70] sm:$0xff]  ;;  %v716_v5 = vld [vmem:[%s3192_s4 + $0x68] sm:$0xff]  ;;  %v715_v8 = vld [vmem:[%s3192_s4 + $0x60] sm:$0xff]  ;;  %vm366_vm1 = vcmask 31744   ;;  %vm730_vm2 = vcmask 261120  }
   0xd   : > { %541 = vmatpush1.msra.mxu0 %v447_v1  ;;  %1844 = vmatprep.subr.mxu1 %v2019_v2  ;;  %v714_v10 = vld [vmem:[%s3192_s4 + $0x58] sm:$0xff]  ;;  %v713_v11 = vld [vmem:[%s3192_s4 + $0x50] sm:$0xff]  ;;  %v712_v13 = vld [vmem:[%s3192_s4 + $0x48] sm:$0xff]  ;;  %s2020_s18 = smov 108   ;;  %s2021_s19 = smov 104   ;;  %vm924_vm3 = vcmask 162816  }
   0xe   : > { %s3203_s30 = smov (!%p295_p3, %s1785_s30), 31  ;;  %779 = vmatprep.subr.mxu0 %v2019_v2  ;;  %1864 = vmatpush1.msra.mxu1 %v718_v3  ;;  %v711_v14 = vld [vmem:[%s3192_s4 + $0x40] sm:$0xff]  ;;  %v710_v16 = vld [vmem:[%s3192_s4 + $0x38] sm:$0xff]  ;;  %v709_v17 = vld [vmem:[%s3192_s4 + $0x30] sm:$0xff]  ;;  %s2022_s20 = smov 100   ;;  %vm1661_vm4 = vcmask 7168  }
   0xf   : > { %1845 = vmatprep.subr.mxu1 %v2019_v2  ;;  %s2093_s12 = sshll.u32 %s3203_s30, 3  ;;  %v708_v19 = vld [vmem:[%s3192_s4 + $0x28] sm:$0xff]  ;;  %v707_v20 = vld [vmem:[%s3192_s4 + $0x20] sm:$0xff]  ;;  %v706_v22 = vld [vmem:[%s3192_s4 + $0x18] sm:$0xff]  ;;  %s2023_s21 = smov 96  }
  0x10   : > { %1865 = vmatpush1.msra.mxu1 %v717_v4  ;;  %s2099_s15 = scalar_lea.vmem %s3188_s0, %s2093_s12  ;;  %v705_v23 = vld [vmem:[%s3192_s4 + $0x10] sm:$0xff]  ;;  %v704_v31 = vld [vmem:[%s3192_s4 + $0x8] sm:$0xff]  ;;  %v703_v33 = vld [vmem:[%s3192_s4] sm:$0xff]  ;;  %s2243_s11 = scalar_lea.vmem %s3189_s1, %s2093_s12 }
  0x11   : > { %1846 = vmatprep.subr.mxu1 %v2019_v2  ;;  %v318_v6 = vld [vmem:[%s2099_s15] sm:$0xff]  ;;  %v319_v7 = vld [vmem:[%s2099_s15 + $0x8] sm:$0xff]  ;;  %v320_v9 = vld [vmem:[%s2099_s15 + $0x10] sm:$0xff]  ;;  %s2024_s22 = smov 92   ;;  %s2025_s23 = smov 124  }
  0x12   : > { %1866 = vmatpush1.msra.mxu1 %v716_v5  ;;  %1809 = vmatmul.mubr.msk.f32.vlgmr.msra.gmra.mxu0 %vm461_vm0, %v318_v6  ;;  %v321_v12 = vld [vmem:[%s2099_s15 + $0x18] sm:$0xff]  ;;  %v322_v15 = vld [vmem:[%s2099_s15 + $0x20] sm:$0xff]  ;;  %v323_v18 = vld [vmem:[%s2099_s15 + $0x28] sm:$0xff]  ;;  %s2026_s25 = smov 120   ;;  %s2027_s26 = smov 116  }
  0x13   : > { %1847 = vmatprep.subr.mxu1 %v2019_v2  ;;  %580 = vmatprep.mubr.f32.mxu0 %v2019_v2  ;;  %v324_v21 = vld [vmem:[%s2099_s15 + $0x30] sm:$0xff]  ;;  %v325_v24 = vld [vmem:[%s2099_s15 + $0x38] sm:$0xff]  ;;  %v326_v25 = vld [vmem:[%s2099_s15 + $0x40] sm:$0xff]  ;;  %s2028_s27 = smov 112   ;;  %s2532_s30 = scalar_lea.vmem %s3195_s7, %s2093_s12 }
  0x14   : > { %780 = vmatpush1.msra.mxu0 %v718_v3  ;;  %1867 = vmatpush1.msra.mxu1 %v715_v8  ;;  %v327_v26 = vld [vmem:[%s2099_s15 + $0x48] sm:$0xff]  ;;  %v328_v27 = vld [vmem:[%s2099_s15 + $0x50] sm:$0xff]  ;;  %v329_v28 = vld [vmem:[%s2099_s15 + $0x58] sm:$0xff]  ;;  %s2648_s9 = scalar_lea.vmem %s3194_s6, %s2093_s12 }
  0x15   : > { %781 = vmatprep.subr.mxu0 %v2019_v2  ;;  %1848 = vmatprep.subr.mxu1 %v2019_v2  ;;  %v330_v29 = vld [vmem:[%s2099_s15 + $0x60] sm:$0xff]  ;;  %v331_v30 = vld [vmem:[%s2099_s15 + $0x68] sm:$0xff]  ;;  %v332_v32 = vld [vmem:[%s2099_s15 + $0x70] sm:$0xff] }
  0x16   : > { %782 = vmatpush1.msra.mxu0 %v717_v4  ;;  %1868 = vmatpush1.msra.mxu1 %v714_v10  ;;  %v722_v34 = vld [vmem:[%s3192_s4 + $0x98] sm:$0xff]  ;;  %v721_v36 = vld [vmem:[%s3192_s4 + $0x90] sm:$0xff]  ;;  %v720_v37 = vld [vmem:[%s3192_s4 + $0x88] sm:$0xff] }
  0x17   : > { %1810 = vmatmul.mubr.msk.f32.gmra.mxu0 %vm461_vm0, %v319_v7  ;;  %783 = vmatprep.subr.mxu0 %v2019_v2  ;;  %v333_v35 = vld [vmem:[%s2099_s15 + $0x78] sm:$0xff]  ;;  %v719_v38 = vld [vmem:[%s3192_s4 + $0x80] sm:$0xff]  ;;  %v2252_v42 = vld [vmem:[%s2243_s11 + $0x10] sm:$0xff] }
  0x18   : > { %586 = vmatprep.mubr.f32.mxu0 %v2019_v2  ;;  %784 = vmatpush1.msra.mxu0 %v716_v5  ;;  %v2246_v39 = vld [vmem:[%s2243_s11] sm:$0xff]  ;;  %v2255_v43 = vld [vmem:[%s2243_s11 + $0x8] sm:$0xff]  ;;  %v337_v44 = vld [vmem:[%s2243_s11 + $0x18] sm:$0xff]  ;;  %v352_v45 = vmul.f32 %v2252_v42, %v2252_v42 }
  0x19   : > { %785 = vmatprep.subr.mxu0 %v2019_v2  ;;  %1849 = vmatprep.subr.mxu1 %v2019_v2  ;;  %v350_v40 = vmul.f32 %v2246_v39, %v2246_v39  ;;  %v351_v46 = vmul.f32 %v2255_v43, %v2255_v43  ;;  %v353_v47 = vmul.f32 %v337_v44, %v337_v44  ;;  %v338_v48 = vld [vmem:[%s2243_s11 + $0x20] sm:$0xff]  ;;  %v339_v50 = vld [vmem:[%s2243_s11 + $0x28] sm:$0xff]  ;;  %v340_v53 = vld [vmem:[%s2243_s11 + $0x30] sm:$0xff] }
  0x1a   : > { %786 = vmatpush1.msra.mxu0 %v715_v8  ;;  %1869 = vmatpush1.msra.mxu1 %v713_v11  ;;  %v354_v49 = vmul.f32 %v338_v48, %v338_v48  ;;  %v373_v51 = vsel %vm366_vm1, %v352_v45, 0.0  ;;  %v355_v55 = vmul.f32 %v339_v50, %v339_v50  ;;  %v356_v57 = vmul.f32 %v340_v53, %v340_v53  ;;  %v341_v58 = vld [vmem:[%s2243_s11 + $0x38] sm:$0xff]  ;;  %v342_v59 = vld [vmem:[%s2243_s11 + $0x40] sm:$0xff]  ;;  %v343_v0 = vld [vmem:[%s2243_s11 + $0x48] sm:$0xff] }
  0x1b   : > { %1811 = vmatmul.mubr.msk.f32.gmra.mxu0 %vm461_vm0, %v320_v9  ;;  %787 = vmatprep.subr.mxu0 %v2019_v2  ;;  %v367_v41 = vsel %vm366_vm1, %v350_v40, 0.0  ;;  %v370_v52 = vsel %vm366_vm1, %v351_v46, 0.0  ;;  %v376_v54 = vsel %vm366_vm1, %v353_v47, 0.0  ;;  %v357_v61 = vmul.f32 %v341_v58, %v341_v58  ;;  %v344_v1 = vld [vmem:[%s2243_s11 + $0x50] sm:$0xff]  ;;  %v345_v6 = vld [vmem:[%s2243_s11 + $0x58] sm:$0xff]  ;;  %v346_v7 = vld [vmem:[%s2243_s11 + $0x60] sm:$0xff] }
  0x1c   : > { %592 = vmatprep.mubr.f32.mxu0 %v2019_v2  ;;  %788 = vmatpush1.msra.mxu0 %v714_v10  ;;  %v379_v56 = vsel %vm366_vm1, %v354_v49, 0.0  ;;  %v382_v60 = vsel %vm366_vm1, %v355_v55, 0.0  ;;  %v385_v62 = vsel %vm366_vm1, %v356_v57, 0.0  ;;  %v358_v63 = vmul.f32 %v342_v59, %v342_v59 }
  0x1d   : > { %789 = vmatprep.subr.mxu0 %v2019_v2  ;;  %1850 = vmatprep.subr.mxu1 %v2019_v2  ;;  %v359_v3 = vmul.f32 %v343_v0, %v343_v0  ;;  %v360_v5 = vmul.f32 %v344_v1, %v344_v1  ;;  %v361_v9 = vmul.f32 %v345_v6, %v345_v6 }
  0x1e   : > { %790 = vmatpush1.msra.mxu0 %v713_v11  ;;  %1870 = vmatpush1.msra.mxu1 %v712_v13  ;;  %v391_v4 = vsel %vm366_vm1, %v358_v63, 0.0  ;;  %v362_v11 = vmul.f32 %v346_v7, %v346_v7 }
  0x1f   : > { %1812 = vmatmul.mubr.msk.f32.gmra.mxu0 %vm461_vm0, %v321_v12  ;;  %791 = vmatprep.subr.mxu0 %v2019_v2  ;;  %v394_v8 = vsel %vm366_vm1, %v359_v3, 0.0  ;;  %v397_v10 = vsel %vm366_vm1, %v360_v5, 0.0  ;;  %v347_v12 = vld [vmem:[%s2243_s11 + $0x68] sm:$0xff] }
  0x20   : > { %598 = vmatprep.mubr.f32.mxu0 %v2019_v2  ;;  %792 = vmatpush1.msra.mxu0 %v712_v13  ;;  %v348_v13 = vld [vmem:[%s2243_s11 + $0x70] sm:$0xff] }
  0x21   : > { %793 = vmatprep.subr.mxu0 %v2019_v2  ;;  %1851 = vmatprep.subr.mxu1 %v2019_v2 }
  0x22   : > { %794 = vmatpush1.msra.mxu0 %v711_v14  ;;  %1871 = vmatpush1.msra.mxu1 %v711_v14  ;;  %v400_v14 = vsel %vm366_vm1, %v361_v9, 0.0 }
  0x23   : > { %1813 = vmatmul.mubr.msk.f32.gmra.mxu0 %vm461_vm0, %v322_v15  ;;  %795 = vmatprep.subr.mxu0 %v2019_v2  ;;  %v363_v15 = vmul.f32 %v347_v12, %v347_v12 }
  0x24   : > { %604 = vmatprep.mubr.f32.mxu0 %v2019_v2  ;;  %796 = vmatpush1.msra.mxu0 %v710_v16 }
  0x25   : > { %797 = vmatprep.subr.mxu0 %v2019_v2  ;;  %1852 = vmatprep.subr.mxu1 %v2019_v2 }
  0x26   : > { %798 = vmatpush1.msra.mxu0 %v709_v17  ;;  %1872 = vmatpush1.msra.mxu1 %v710_v16  ;;  %v403_v16 = vsel %vm366_vm1, %v362_v11, 0.0 }
  0x27   : > { %1814 = vmatmul.mubr.msk.f32.gmra.mxu0 %vm461_vm0, %v323_v18  ;;  %799 = vmatprep.subr.mxu0 %v2019_v2  ;;  %v349_v18 = vld [vmem:[%s2243_s11 + $0x78] sm:$0xff] }
  0x28   : > { %610 = vmatprep.mubr.f32.mxu0 %v2019_v2  ;;  %800 = vmatpush1.msra.mxu0 %v708_v19 }
  0x29   : > { %801 = vmatprep.subr.mxu0 %v2019_v2  ;;  %1853 = vmatprep.subr.mxu1 %v2019_v2 }
  0x2a   : > { %802 = vmatpush1.msra.mxu0 %v707_v20  ;;  %1873 = vmatpush1.msra.mxu1 %v709_v17  ;;  %v364_v17 = vmul.f32 %v348_v13, %v348_v13 }
  0x2b   : > { %1815 = vmatmul.mubr.msk.f32.gmra.mxu0 %vm461_vm0, %v324_v21  ;;  %803 = vmatprep.subr.mxu0 %v2019_v2 }
  0x2c   : > { %616 = vmatprep.mubr.f32.mxu0 %v2019_v2  ;;  %804 = vmatpush1.msra.mxu0 %v706_v22  ;;  %v409_v21 = vsel %vm366_vm1, %v364_v17, 0.0 }
  0x2d   : > { %805 = vmatprep.subr.mxu0 %v2019_v2  ;;  %1854 = vmatprep.subr.mxu1 %v2019_v2 }
  0x2e   : > { %806 = vmatpush1.msra.mxu0 %v705_v23  ;;  %1874 = vmatpush1.msra.mxu1 %v708_v19  ;;  %v406_v19 = vsel %vm366_vm1, %v363_v15, 0.0 }
  0x2f   : > { %1816 = vmatmul.mubr.msk.f32.gmra.mxu0 %vm461_vm0, %v325_v24  ;;  %807 = vmatprep.subr.mxu0 %v2019_v2 }
  0x30   : > { %622 = vmatprep.mubr.f32.mxu0 %v2019_v2  ;;  %1855 = vmatprep.subr.mxu1 %v2019_v2 }
  0x31   : > { %1875 = vmatpush1.msra.mxu1 %v707_v20  ;;  %808 = vmatpush1.msra.mxu0 %v704_v31  ;;  %v365_v20 = vmul.f32 %v349_v18, %v349_v18 }
  0x32   : > { %1856 = vmatprep.subr.mxu1 %v2019_v2  ;;  %809 = vmatprep.subr.mxu0 %v2019_v2 }
  0x33   : > { %1817 = vmatmul.mubr.msk.f32.gmra.mxu0 %vm461_vm0, %v326_v25  ;;  %1876 = vmatpush1.msra.mxu1 %v706_v22  ;;  %v412_v22 = vsel %vm366_vm1, %v365_v20, 0.0 }
  0x34   : > { %628 = vmatprep.mubr.f32.mxu0 %v2019_v2  ;;  %1857 = vmatprep.subr.mxu1 %v2019_v2 }
  0x35   : > { %1877 = vmatpush1.msra.mxu1 %v705_v23  ;;  %810 = vmatpush1.msra.mxu0 %v703_v33  ;;  %v451_v23 = vlaneseq }
  0x36   : > { %1858 = vmatprep.subr.mxu1 %v2019_v2  ;;  %835 = vmatprep.subr.mxu0 %v2019_v2 }
  0x37   : > { %1818 = vmatmul.mubr.msk.f32.gmra.mxu0 %vm461_vm0, %v327_v26  ;;  %1878 = vmatpush1.msra.mxu1 %v704_v31  ;;  %v452_v24 = vshrl.u32 %v451_v23, 7  ;;  %v449_v26 = vld [vmem:[%s3191_s3] sm:$0x3] }
  0x38   : > { %634 = vmatprep.mubr.f32.mxu0 %v2019_v2  ;;  %1859 = vmatprep.subr.mxu1 %v2019_v2 }
  0x39   : > { %1879 = vmatpush1.msra.mxu1 %v703_v33  ;;  %836 = vmatpush2.msra.mxu0 %v722_v34  ;;  %v453_v25 = vsub.s32 0, %v452_v24 }
  0x3a   : > { %1860 = vmatprep.subr.mxu1 %v2019_v2  ;;  %837 = vmatprep.subr.mxu0 %v2019_v2 }
  0x3b   : > { %1819 = vmatmul.mubr.msk.f32.gmra.mxu0 %vm461_vm0, %v328_v27  ;;  %1880 = vmatpush2.msra.mxu1 %v722_v34  ;;  %v457_v27 = vsub.s32 1, %v452_v24 }
  0x3c   : > { %640 = vmatprep.mubr.f32.mxu0 %v2019_v2  ;;  %838 = vmatpush2.msra.mxu0 %v721_v36 }
  0x3d   : > { %839 = vmatprep.subr.mxu0 %v2019_v2  ;;  %1861 = vmatprep.subr.mxu1 %v2019_v2 }
  0x3e   : > { %840 = vmatpush2.msra.mxu0 %v720_v37  ;;  %1881 = vmatpush2.msra.mxu1 %v721_v36 }
  0x3f   : > { %1820 = vmatmul.mubr.msk.f32.gmra.mxu0 %vm461_vm0, %v329_v28  ;;  %841 = vmatprep.subr.mxu0 %v2019_v2  ;;  %v2292_v28 = vrot.slane %v449_v26, %v453_v25 }
  0x40   : > { %646 = vmatprep.mubr.f32.mxu0 %v2019_v2  ;;  %1862 = vmatprep.subr.mxu1 %v2019_v2 }
  0x41   : > { %842 = vmatpush2.msra.mxu0 %v719_v38  ;;  %1882 = vmatpush2.msra.mxu1 %v720_v37 }
  0x42   : > { %1863 = vmatprep.subr.mxu1 %v2019_v2  ;;  %368 = vadd.xlane.f32.xlu0 %v367_v41 }
  0x43   : > { %1821 = vmatmul.mubr.msk.f32.gmra.mxu0 %vm461_vm0, %v330_v29  ;;  %1883 = vmatpush2.msra.mxu1 %v719_v38  ;;  %v2294_v29 = vrot.slane %v449_v26, %v457_v27 }
  0x44   : > { %652 = vmatprep.mubr.f32.mxu0 %v2019_v2  ;;  %374 = vadd.xlane.f32.xlu1 %v373_v51 }
  0x46   : > { %371 = vadd.xlane.f32.xlu0 %v370_v52 }
  0x47   : > { %1822 = vmatmul.mubr.msk.f32.gmra.mxu0 %vm461_vm0, %v331_v30 }
  0x48   : > { %658 = vmatprep.mubr.f32.mxu0 %v2019_v2  ;;  %377 = vadd.xlane.f32.xlu1 %v376_v54 }
  0x4a   : > { %380 = vadd.xlane.f32.xlu0 %v379_v56 }
  0x4b   : > { %1823 = vmatmul.mubr.msk.f32.gmra.mxu0 %vm461_vm0, %v332_v32 }
  0x4c   : > { %664 = vmatprep.mubr.f32.mxu0 %v2019_v2  ;;  %383 = vadd.xlane.f32.xlu1 %v382_v60  ;;  %v388_v2 = vsel %vm366_vm1, %v357_v61, 0.0 }
  0x4e   : > { %386 = vadd.xlane.f32.xlu0 %v385_v62 }
  0x4f   : > { %1824 = vmatmul.mubr.msk.f32.gmra.mxu0 %vm461_vm0, %v333_v35 }
  0x50   : > { %389 = vadd.xlane.f32.xlu1 %v388_v2 }
  0x52   : > { %392 = vadd.xlane.f32.xlu0 %v391_v4 }
  0x54   : > { %395 = vadd.xlane.f32.xlu1 %v394_v8 }
  0x56   : > { %398 = vadd.xlane.f32.xlu0 %v397_v10 }
  0x58   : > { %401 = vadd.xlane.f32.xlu1 %v400_v14 }
  0x5a   : > { %404 = vadd.xlane.f32.xlu0 %v403_v16 }
  0x5c   : > { %407 = vadd.xlane.f32.xlu1 %v406_v19 }
  0x5e   : > { %410 = vadd.xlane.f32.xlu0 %v409_v21 }
  0x60   : > { %413 = vadd.xlane.f32.xlu1 %v412_v22 }
  0xd2   : > { %v576_v30 = vpop.f32.mrf.mxu0 }
  0xd3   : > { %v577_v31 = vadd.f32 %v576_v30, %v2292_v28 }
  0xd4   : > { %v578_v32 = vpop.f32.mrf.mxu0 }
  0xd5   : > { %v579_v33 = vadd.f32 %v578_v32, %v2294_v29 }
  0xd7   : > { %v582_v34 = vpop.f32.mrf.mxu0  ;;  %1902 = vtanh.f32 %v579_v33 }
  0xd8   : > { %1904 = vtanh.f32 %v577_v31  ;;  %v583_v35 = vadd.f32 %v582_v34, %v2292_v28 }
  0xd9   : > { %v584_v36 = vpop.f32.mrf.mxu0 }
  0xda   : > { %v585_v37 = vadd.f32 %v584_v36, %v2294_v29 }
  0xdb   : > { %v588_v38 = vpop.f32.mrf.mxu0 }
  0xdc   : > { %1906 = vtanh.f32 %v585_v37  ;;  %v589_v40 = vadd.f32 %v588_v38, %v2292_v28 }
  0xdd   : > { %1908 = vtanh.f32 %v583_v35  ;;  %v590_v41 = vpop.f32.mrf.mxu0 }
  0xde   : > { %v591_v44 = vadd.f32 %v590_v41, %v2294_v29  ;;  %1910 = vtanh.f32 %v589_v40 }
  0xdf   : > { %v594_v45 = vpop.f32.mrf.mxu0 }
  0xe0   : > { %1912 = vtanh.f32 %v591_v44  ;;  %v595_v46 = vadd.f32 %v594_v45, %v2292_v28 }
  0xe1   : > { %v596_v47 = vpop.f32.mrf.mxu0 }
  0xe2   : > { %v597_v48 = vadd.f32 %v596_v47, %v2294_v29  ;;  %1914 = vtanh.f32 %v595_v46 }
  0xe3   : > { %v600_v49 = vpop.f32.mrf.mxu0 }
  0xe4   : > { %1916 = vtanh.f32 %v597_v48  ;;  %v601_v50 = vadd.f32 %v600_v49, %v2292_v28  ;;  %v1903_v51 = vpop.eup %1902 }
  0xe5   : > { %v602_v52 = vpop.f32.mrf.mxu0  ;;  %v1905_v53 = vpop.eup %1904  ;;  %1826 = vmatprep.mubr.msk.f32.mxu0 %vm730_vm2, %v1903_v51 }
  0xe6   : > { %v603_v54 = vadd.f32 %v602_v52, %v2294_v29  ;;  %844 = vmatmul.mubr.f32.vlgmr.msra.gmra.mxu0 %v1905_v53  ;;  %1918 = vtanh.f32 %v601_v50 }
  0xe7   : > { %v606_v55 = vpop.f32.mrf.mxu0 }
  0xe8   : > { %1920 = vtanh.f32 %v603_v54  ;;  %v607_v56 = vadd.f32 %v606_v55, %v2292_v28 }
  0xe9   : > { %v1907_v57 = vpop.eup %1906  ;;  %v608_v58 = vpop.f32.mrf.mxu0 }
  0xea   : > { %v1909_v59 = vpop.eup %1908  ;;  %1827 = vmatprep.mubr.msk.f32.mxu0 %vm730_vm2, %v1907_v57  ;;  %v609_v60 = vadd.f32 %v608_v58, %v2294_v29  ;;  %1922 = vtanh.f32 %v607_v56 }
  0xeb   : > { %849 = vmatmul.mubr.f32.gmra.mxu0 %v1909_v59  ;;  %v612_v61 = vpop.f32.mrf.mxu0  ;;  %v1911_v62 = vpop.eup %1910 }
  0xec   : > { %1924 = vtanh.f32 %v609_v60  ;;  %v613_v63 = vadd.f32 %v612_v61, %v2292_v28 }
  0xed   : > { %v1913_v0 = vpop.eup %1912  ;;  %v614_v1 = vpop.f32.mrf.mxu0 }
  0xee   : > { %1828 = vmatprep.mubr.msk.f32.mxu0 %vm730_vm2, %v1913_v0  ;;  %v615_v2 = vadd.f32 %v614_v1, %v2294_v29  ;;  %1926 = vtanh.f32 %v613_v63 }
  0xef   : > { %854 = vmatmul.mubr.f32.gmra.mxu0 %v1911_v62  ;;  %v618_v3 = vpop.f32.mrf.mxu0  ;;  %v1915_v4 = vpop.eup %1914 }
  0xf0   : > { %1928 = vtanh.f32 %v615_v2  ;;  %v619_v5 = vadd.f32 %v618_v3, %v2292_v28 }
  0xf1   : > { %v1917_v6 = vpop.eup %1916  ;;  %v620_v7 = vpop.f32.mrf.mxu0 }
  0xf2   : > { %1829 = vmatprep.mubr.msk.f32.mxu0 %vm730_vm2, %v1917_v6  ;;  %v621_v8 = vadd.f32 %v620_v7, %v2294_v29  ;;  %1930 = vtanh.f32 %v619_v5 }
  0xf3   : > { %859 = vmatmul.mubr.f32.gmra.mxu0 %v1915_v4  ;;  %v624_v9 = vpop.f32.mrf.mxu0  ;;  %v1919_v10 = vpop.eup %1918 }
  0xf4   : > { %1932 = vtanh.f32 %v621_v8  ;;  %v625_v11 = vadd.f32 %v624_v9, %v2292_v28 }
  0xf5   : > { %v1921_v12 = vpop.eup %1920  ;;  %v626_v13 = vpop.f32.mrf.mxu0 }
  0xf6   : > { %1830 = vmatprep.mubr.msk.f32.mxu1 %vm730_vm2, %v1921_v12  ;;  %v627_v14 = vadd.f32 %v626_v13, %v2294_v29  ;;  %1934 = vtanh.f32 %v625_v11 }
  0xf7   : > { %864 = vmatmul.mubr.f32.vlgmr.msra.gmra.mxu1 %v1919_v10  ;;  %v630_v15 = vpop.f32.mrf.mxu0  ;;  %v1923_v16 = vpop.eup %1922 }
  0xf8   : > { %1936 = vtanh.f32 %v627_v14  ;;  %v631_v17 = vadd.f32 %v630_v15, %v2292_v28 }
  0xf9   : > { %v1925_v18 = vpop.eup %1924  ;;  %v632_v19 = vpop.f32.mrf.mxu0 }
  0xfa   : > { %1831 = vmatprep.mubr.msk.f32.mxu1 %vm730_vm2, %v1925_v18  ;;  %v633_v20 = vadd.f32 %v632_v19, %v2294_v29  ;;  %1938 = vtanh.f32 %v631_v17 }
  0xfb   : > { %869 = vmatmul.mubr.f32.gmra.mxu1 %v1923_v16  ;;  %v636_v21 = vpop.f32.mrf.mxu0  ;;  %v1927_v22 = vpop.eup %1926 }
  0xfc   : > { %1940 = vtanh.f32 %v633_v20  ;;  %v637_v23 = vadd.f32 %v636_v21, %v2292_v28 }
  0xfd   : > { %v1929_v24 = vpop.eup %1928  ;;  %v638_v25 = vpop.f32.mrf.mxu0 }
  0xfe   : > { %v639_v26 = vadd.f32 %v638_v25, %v2294_v29  ;;  %1832 = vmatprep.mubr.msk.f32.mxu1 %vm730_vm2, %v1929_v24  ;;  %1942 = vtanh.f32 %v637_v23 }
  0xff   : > { %v642_v27 = vpop.f32.mrf.mxu0  ;;  %874 = vmatmul.mubr.f32.gmra.mxu1 %v1927_v22  ;;  %v1931_v30 = vpop.eup %1930 }
 0x100   : > { %1944 = vtanh.f32 %v639_v26  ;;  %v643_v31 = vadd.f32 %v642_v27, %v2292_v28 }
 0x101   : > { %v1933_v32 = vpop.eup %1932  ;;  %v644_v33 = vpop.f32.mrf.mxu0 }
 0x102   : > { %v645_v34 = vadd.f32 %v644_v33, %v2294_v29  ;;  %1833 = vmatprep.mubr.msk.f32.mxu1 %vm730_vm2, %v1933_v32  ;;  %1946 = vtanh.f32 %v643_v31 }
 0x103   : > { %v648_v35 = vpop.f32.mrf.mxu0  ;;  %879 = vmatmul.mubr.f32.gmra.mxu1 %v1931_v30  ;;  %v1935_v36 = vpop.eup %1934 }
 0x104   : > { %1948 = vtanh.f32 %v645_v34  ;;  %v649_v37 = vadd.f32 %v648_v35, %v2292_v28 }
 0x105   : > { %v1937_v38 = vpop.eup %1936  ;;  %v650_v40 = vpop.f32.mrf.mxu0 }
 0x106   : > { %v651_v41 = vadd.f32 %v650_v40, %v2294_v29  ;;  %1834 = vmatprep.mubr.msk.f32.mxu1 %vm730_vm2, %v1937_v38  ;;  %1950 = vtanh.f32 %v649_v37 }
 0x107   : > { %884 = vmatmul.mubr.f32.gmra.mxu1 %v1935_v36  ;;  %v1939_v44 = vpop.eup %1938  ;;  %v654_v52 = vpop.f32.mrf.mxu0 }
 0x108   : > { %1952 = vtanh.f32 %v651_v41  ;;  %v655_v53 = vadd.f32 %v654_v52, %v2292_v28 }
 0x109   : > { %v1941_v45 = vpop.eup %1940  ;;  %v656_v54 = vpop.f32.mrf.mxu0 }
 0x10a   : > { %1835 = vmatprep.mubr.msk.f32.mxu1 %vm730_vm2, %v1941_v45  ;;  %v657_v55 = vadd.f32 %v656_v54, %v2294_v29  ;;  %1954 = vtanh.f32 %v655_v53 }
 0x10b   : > { %889 = vmatmul.mubr.f32.gmra.mxu1 %v1939_v44  ;;  %v1943_v46 = vpop.eup %1942  ;;  %v660_v56 = vpop.f32.mrf.mxu0 }
 0x10c   : > { %1956 = vtanh.f32 %v657_v55  ;;  %v661_v57 = vadd.f32 %v660_v56, %v2292_v28 }
 0x10d   : > { %v1945_v47 = vpop.eup %1944  ;;  %v662_v58 = vpop.f32.mrf.mxu0 }
 0x10e   : > { %1836 = vmatprep.mubr.msk.f32.mxu1 %vm730_vm2, %v1945_v47  ;;  %v663_v59 = vadd.f32 %v662_v58, %v2294_v29  ;;  %1958 = vtanh.f32 %v661_v57 }
 0x10f   : > { %894 = vmatmul.mubr.f32.gmra.mxu1 %v1943_v46  ;;  %v1947_v48 = vpop.eup %1946  ;;  %v666_v60 = vpop.f32.mrf.mxu0 }
 0x110   : > { %1960 = vtanh.f32 %v663_v59  ;;  %v667_v61 = vadd.f32 %v666_v60, %v2292_v28  ;;  %v2347_v28 = vld [vmem:[%s3193_s5] ss:$0 sm:$0xff] }
 0x111   : > { %v1949_v49 = vpop.eup %1948  ;;  %v668_v62 = vpop.f32.mrf.mxu0 }
 0x112   : > { %1837 = vmatprep.mubr.msk.f32.mxu1 %vm730_vm2, %v1949_v49  ;;  %v669_v63 = vadd.f32 %v668_v62, %v2294_v29  ;;  %1962 = vtanh.f32 %v667_v61 }
 0x113   : > { %899 = vmatmul.mubr.f32.gmra.mxu1 %v1947_v48  ;;  %v1951_v50 = vpop.eup %1950  ;;  %v369_v48 = vpop.xlane.xlu0 %368 }
 0x114   : > { %1964 = vtanh.f32 %v669_v63 }
 0x115   : > { %v1953_v51 = vpop.eup %1952 }
 0x116   : > { %1838 = vmatprep.mubr.msk.f32.mxu1 %vm730_vm2, %v1953_v51  ;;  %v2431_v51 = vpop.xlane.xlu1 %374 }
 0x117   : > { %904 = vmatmul.mubr.f32.gmra.mxu1 %v1951_v50  ;;  %v1955_v0 = vpop.eup %1954  ;;  %v2429_v50 = vpop.xlane.xlu0 %371 }
 0x119   : > { %v1957_v1 = vpop.eup %1956 }
 0x11a   : > { %1839 = vmatprep.mubr.msk.f32.mxu1 %vm730_vm2, %v1957_v1  ;;  %v2436_v54 = vpop.xlane.xlu1 %377 }
 0x11b   : > { %909 = vmatmul.mubr.f32.gmra.mxu1 %v1955_v0  ;;  %v1959_v2 = vpop.eup %1958  ;;  %v2434_v53 = vpop.xlane.xlu0 %380 }
 0x11d   : > { %v1961_v3 = vpop.eup %1960 }
 0x11e   : > { %1840 = vmatprep.mubr.msk.f32.mxu1 %vm730_vm2, %v1961_v3  ;;  %v2442_v57 = vpop.xlane.xlu1 %383 }
 0x11f   : > { %914 = vmatmul.mubr.f32.gmra.mxu1 %v1959_v2  ;;  %v1963_v4 = vpop.eup %1962  ;;  %v2438_v55 = vpop.xlane.xlu0 %386 }
 0x121   : > { %v1965_v5 = vpop.eup %1964 }
 0x122   : > { %1841 = vmatprep.mubr.msk.f32.mxu1 %vm730_vm2, %v1965_v5  ;;  %v2452_v61 = vpop.xlane.xlu1 %389 }
 0x123   : > { %919 = vmatmul.mubr.f32.gmra.mxu1 %v1963_v4  ;;  %v2448_v60 = vpop.xlane.xlu0 %392 }
 0x126   : > { %v2460_v0 = vpop.xlane.xlu1 %395 }
 0x127   : > { %v2456_v63 = vpop.xlane.xlu0 %398 }
 0x12a   : > { %v2474_v3 = vpop.xlane.xlu1 %401 }
 0x12b   : > { %v2464_v1 = vpop.xlane.xlu0 %404 }
 0x12f   : > { %v2478_v5 = vpop.xlane.xlu0 %410 }
 0x130   : > { %3196 = vst [vmem:[#allocation2_spill] sm:$0xff] %v2478_v5 }
 0x1a6   : > { %v845_v29 = vpop.f32.mrf.mxu0 }
 0x1a7   : > { %v2350_v6 = vadd.f32 %v2347_v28, %v845_v29  ;;  %v2484_v29 = vpop.xlane.xlu1 %407 }
 0x1a8   : > { %v847_v7 = vpop.f32.mrf.mxu0  ;;  %3197 = vst [vmem:[#allocation3_spill] sm:$0xff] %v2484_v29 }
 0x1a9   : > { %1053 = vrot.lane.b32.xlu0 %v2350_v6, %s2020_s18  ;;  %v925_v25 = vsel %vm924_vm3, %v2350_v6, 0.0  ;;  %v989_v52 = vmul.f32 1.442695, %v2350_v6 }
 0x1ab   : > { %v850_v8 = vpop.f32.mrf.mxu0  ;;  %1966 = vpow2.f32 %v989_v52  ;;  %v2496_v7 = vpop.xlane.xlu1 %413  ;;  %v417_v52 = vmul.f32 -0.5, %v2431_v51 }
 0x1ac   : > { %v2355_v9 = vadd.f32 %v2347_v28, %v850_v8  ;;  %3198 = vst [vmem:[#allocation4_spill] sm:$0xff] %v2496_v7 }
 0x1ad   : > { %v852_v10 = vpop.f32.mrf.mxu0  ;;  %1197 = vrot.lane.b32.xlu0 %v2350_v6, %s2021_s19 }
 0x1ae   : > { %1055 = vrot.lane.b32.xlu1 %v2355_v9, %s2020_s18  ;;  %v928_v33 = vsel %vm924_vm3, %v2355_v9, 0.0  ;;  %v991_v59 = vmul.f32 1.442695, %v2355_v9 }
 0x1af   : > { %v855_v11 = vpop.f32.mrf.mxu0 }
 0x1b0   : > { %v2398_v38 = vadd.f32 %v2347_v28, %v855_v11  ;;  %1968 = vpow2.f32 %v991_v59 }
 0x1b1   : > { %v857_v12 = vpop.f32.mrf.mxu0  ;;  %1325 = vrot.lane.b32.xlu0 %v2350_v6, %s2022_s20 }
 0x1b2   : > { %1199 = vrot.lane.b32.xlu1 %v2355_v9, %s2021_s19  ;;  %v931_v49 = vsel %vm924_vm3, %v2398_v38, 0.0 }
 0x1b3   : > { %v860_v13 = vpop.f32.mrf.mxu0 }
 0x1b4   : > { %v2411_v47 = vadd.f32 %v2347_v28, %v860_v13 }
 0x1b5   : > { %v862_v14 = vpop.f32.mrf.mxu0  ;;  %1453 = vrot.lane.b32.xlu0 %v2350_v6, %s2023_s21 }
 0x1b6   : > { %1327 = vrot.lane.b32.xlu1 %v2355_v9, %s2022_s20  ;;  %v934_v56 = vsel %vm924_vm3, %v2411_v47, 0.0  ;;  %v415_v14 = vmul.f32 -0.5, %v369_v48 }
 0x1b7   : > { %v865_v15 = vpop.f32.mrf.mxu1 }
 0x1b8   : > { %v2445_v58 = vadd.f32 %v2347_v28, %v865_v15  ;;  %v2454_v62 = vpop.eup %1966 }
 0x1b9   : > { %v867_v16 = vpop.f32.mrf.mxu1  ;;  %1581 = vrot.lane.b32.xlu0 %v2350_v6, %s2024_s22 }
 0x1ba   : > { %1455 = vrot.lane.b32.xlu1 %v2355_v9, %s2023_s21  ;;  %v1793_v16 = vadd.f32 -3.675754, %v415_v14  ;;  %v1795_v14 = vadd.f32 -3.675754, %v417_v52 }
 0x1bb   : > { %v2373_v17 = vpop.f32.mrf.mxu1 }
 0x1bc   : > { %v2468_v2 = vadd.f32 %v2347_v28, %v2373_v17 }
 0x1bd   : > { %v872_v18 = vpop.f32.mrf.mxu1  ;;  %v2476_v4 = vpop.eup %1968 }
 0x1be   : > { %1583 = vrot.lane.b32.xlu1 %v2355_v9, %s2024_s22 }
 0x1bf   : > { %v2377_v19 = vpop.f32.mrf.mxu1 }
 0x1c1   : > { %v877_v20 = vpop.f32.mrf.mxu1 }
 0x1c3   : > { %v2379_v21 = vpop.f32.mrf.mxu1 }
 0x1c5   : > { %v882_v22 = vpop.f32.mrf.mxu1 }
 0x1c6   : > { %v416_v22 = vmul.f32 -0.5, %v2429_v50 }
 0x1c7   : > { %v2381_v23 = vpop.f32.mrf.mxu1 }
 0x1c9   : > { %v887_v24 = vpop.f32.mrf.mxu1 }
 0x1cb   : > { %v2385_v26 = vpop.f32.mrf.mxu1 }
 0x1cd   : > { %v892_v27 = vpop.f32.mrf.mxu1 }
 0x1cf   : > { %v2387_v30 = vpop.f32.mrf.mxu1 }
 0x1d1   : > { %v897_v31 = vpop.f32.mrf.mxu1 }
 0x1d3   : > { %v2389_v32 = vpop.f32.mrf.mxu1 }
 0x1d5   : > { %v902_v34 = vpop.f32.mrf.mxu1 }
 0x1d6   : > { %v993_v34 = vmul.f32 1.442695, %v2398_v38 }
 0x1d7   : > { %v2393_v35 = vpop.f32.mrf.mxu1 }
 0x1d8   : > { %926 = vadd.xlane.f32.xlu0 %v925_v25  ;;  %v1794_v25 = vadd.f32 -3.675754, %v416_v22  ;;  %1970 = vpow2.f32 %v993_v34 }
 0x1d9   : > { %v907_v36 = vpop.f32.mrf.mxu1 }
 0x1da   : > { %v940_v36 = vsel %vm924_vm3, %v2468_v2, 0.0 }
 0x1db   : > { %v2395_v37 = vpop.f32.mrf.mxu1 }
 0x1dd   : > { %v912_v40 = vpop.f32.mrf.mxu1 }
 0x1de   : > { %v995_v40 = vmul.f32 1.442695, %v2411_v47 }
 0x1df   : > { %v2400_v41 = vpop.f32.mrf.mxu1 }
 0x1e0   : > { %1972 = vpow2.f32 %v995_v40 }
 0x1e1   : > { %v917_v44 = vpop.f32.mrf.mxu1 }
 0x1e2   : > { %929 = vadd.xlane.f32.xlu1 %v928_v33  ;;  %v937_v33 = vsel %vm924_vm3, %v2445_v58, 0.0  ;;  %v2549_v44 = vadd.f32 %v2347_v28, %v2377_v19 }
 0x1e3   : > { %v2404_v45 = vpop.f32.mrf.mxu1 }
 0x1e5   : > { %v922_v46 = vpop.f32.mrf.mxu1 }
 0x1e6   : > { %v2553_v46 = vpop.eup %1970 }
 0x1ee   : > { %1201 = vrot.lane.b32.xlu0 %v2398_v38, %s2021_s19 }
 0x1f2   : > { %1329 = vrot.lane.b32.xlu0 %v2398_v38, %s2022_s20 }
 0x1f3   : > { %1057 = vrot.lane.b32.xlu1 %v2398_v38, %s2020_s18 }
 0x1f6   : > { %1457 = vrot.lane.b32.xlu0 %v2398_v38, %s2023_s21 }
 0x1f7   : > { %1059 = vrot.lane.b32.xlu1 %v2411_v47, %s2020_s18 }
 0x1fa   : > { %1585 = vrot.lane.b32.xlu0 %v2398_v38, %s2024_s22 }
 0x1fb   : > { %1203 = vrot.lane.b32.xlu1 %v2411_v47, %s2021_s19 }
 0x1ff   : > { %1331 = vrot.lane.b32.xlu1 %v2411_v47, %s2022_s20 }
 0x203   : > { %1459 = vrot.lane.b32.xlu1 %v2411_v47, %s2023_s21 }
 0x207   : > { %1587 = vrot.lane.b32.xlu1 %v2411_v47, %s2024_s22  ;;  %v2563_v47 = vadd.f32 %v2347_v28, %v2379_v21 }
 0x219   : > { %932 = vadd.xlane.f32.xlu0 %v931_v49  ;;  %v2573_v49 = vpop.eup %1972 }
 0x21b   : > { %v2490_v6 = vpop.permute.xlu0 %1053 }
 0x21f   : > { %v2498_v8 = vpop.permute.xlu0 %1197 }
 0x220   : > { %v2504_v9 = vpop.permute.xlu1 %1055 }
 0x223   : > { %v2510_v10 = vpop.permute.xlu0 %1325 }
 0x224   : > { %v2514_v11 = vpop.permute.xlu1 %1199 }
 0x227   : > { %v2516_v12 = vpop.permute.xlu0 %1453 }
 0x228   : > { %v2520_v13 = vpop.permute.xlu1 %1327 }
 0x22b   : > { %935 = vadd.xlane.f32.xlu1 %v934_v56  ;;  %v2524_v15 = vpop.permute.xlu0 %1581 }
 0x22c   : > { %v2526_v17 = vpop.permute.xlu1 %1455 }
 0x22f   : > { %1061 = vrot.lane.b32.xlu0 %v2445_v58, %s2020_s18 }
 0x230   : > { %v2537_v24 = vpop.permute.xlu1 %1583 }
 0x233   : > { %1133 = vrot.lane.b32.xlu0 %v2454_v62, %s2025_s23 }
 0x237   : > { %1205 = vrot.lane.b32.xlu0 %v2445_v58, %s2021_s19 }
 0x23b   : > { %1261 = vrot.lane.b32.xlu0 %v2454_v62, %s2026_s25 }
 0x23c   : > { %1063 = vrot.lane.b32.xlu1 %v2468_v2, %s2020_s18 }
 0x23f   : > { %1333 = vrot.lane.b32.xlu0 %v2445_v58, %s2022_s20 }
 0x240   : > { %1135 = vrot.lane.b32.xlu1 %v2476_v4, %s2025_s23 }
 0x243   : > { %1389 = vrot.lane.b32.xlu0 %v2454_v62, %s2027_s26 }
 0x244   : > { %1207 = vrot.lane.b32.xlu1 %v2468_v2, %s2021_s19 }
 0x247   : > { %1461 = vrot.lane.b32.xlu0 %v2445_v58, %s2023_s21 }
 0x248   : > { %1263 = vrot.lane.b32.xlu1 %v2476_v4, %s2026_s25 }
 0x24b   : > { %1517 = vrot.lane.b32.xlu0 %v2454_v62, %s2028_s27 }
 0x24c   : > { %1335 = vrot.lane.b32.xlu1 %v2468_v2, %s2022_s20 }
 0x24f   : > { %1589 = vrot.lane.b32.xlu0 %v2445_v58, %s2024_s22 }
 0x250   : > { %1391 = vrot.lane.b32.xlu1 %v2476_v4, %s2027_s26 }
 0x254   : > { %1463 = vrot.lane.b32.xlu1 %v2468_v2, %s2023_s21 }
 0x258   : > { %1519 = vrot.lane.b32.xlu1 %v2476_v4, %s2028_s27 }
 0x25c   : > { %1591 = vrot.lane.b32.xlu1 %v2468_v2, %s2024_s22 }
 0x261   : > { %v927_v18 = vpop.xlane.xlu0 %926 }
 0x262   : > { %v973_v20 = vsub.f32 %v1793_v16, %v927_v18 }
 0x264   : > { %1662 = vst.msk [vmem:[%s2532_s30] sm:$0xff] %vm1661_vm4, %v973_v20 }
 0x265   : > { %v2557_v38 = vpop.permute.xlu0 %1201 }
 0x269   : > { %v2571_v48 = vpop.permute.xlu0 %1329 }
 0x26b   : > { %v930_v27 = vpop.xlane.xlu1 %929 }
 0x26c   : > { %v974_v31 = vsub.f32 %v1794_v25, %v930_v27  ;;  %v1021_v27 = vmul.f32 %v2454_v62, %v2246_v39 }
 0x26d   : > { %v2581_v50 = vpop.permute.xlu0 %1457 }
 0x26e   : > { %1663 = vst.msk [vmem:[%s2532_s30 + $0x8] sm:$0xff] %vm1661_vm4, %v974_v31  ;;  %938 = vadd.xlane.f32.xlu0 %v937_v33  ;;  %v418_v31 = vmul.f32 -0.5, %v2436_v54  ;;  %v1101_v34 = vadd.f32 %v2490_v6, %v1021_v27 }
 0x26f   : > { %v2569_v19 = vpop.permute.xlu1 %1057 }
 0x270   : > { %v1796_v52 = vadd.f32 -3.675754, %v418_v31 }
 0x271   : > { %v2594_v59 = vpop.permute.xlu0 %1585 }
 0x273   : > { %v2579_v21 = vpop.permute.xlu1 %1059 }
 0x277   : > { %v2592_v56 = vpop.permute.xlu1 %1203 }
 0x27b   : > { %v2600_v18 = vpop.permute.xlu1 %1331 }
 0x27f   : > { %v2612_v22 = vpop.permute.xlu1 %1459 }
 0x280   : > { %941 = vadd.xlane.f32.xlu1 %v940_v36 }
 0x283   : > { %v2622_v36 = vpop.permute.xlu1 %1587 }
 0x284   : > { %1065 = vrot.lane.b32.xlu0 %v2549_v44, %s2020_s18 }
 0x288   : > { %1137 = vrot.lane.b32.xlu0 %v2553_v46, %s2025_s23 }
 0x28c   : > { %1209 = vrot.lane.b32.xlu0 %v2549_v44, %s2021_s19 }
 0x290   : > { %1265 = vrot.lane.b32.xlu0 %v2553_v46, %s2026_s25 }
 0x291   : > { %1067 = vrot.lane.b32.xlu1 %v2563_v47, %s2020_s18 }
 0x294   : > { %1337 = vrot.lane.b32.xlu0 %v2549_v44, %s2022_s20 }
 0x295   : > { %1139 = vrot.lane.b32.xlu1 %v2573_v49, %s2025_s23 }
 0x298   : > { %1393 = vrot.lane.b32.xlu0 %v2553_v46, %s2027_s26 }
 0x299   : > { %1211 = vrot.lane.b32.xlu1 %v2563_v47, %s2021_s19 }
 0x29c   : > { %1465 = vrot.lane.b32.xlu0 %v2549_v44, %s2023_s21 }
 0x29d   : > { %1267 = vrot.lane.b32.xlu1 %v2573_v49, %s2026_s25 }
 0x2a0   : > { %1521 = vrot.lane.b32.xlu0 %v2553_v46, %s2028_s27 }
 0x2a1   : > { %1339 = vrot.lane.b32.xlu1 %v2563_v47, %s2022_s20 }
 0x2a2   : > { %v933_v16 = vpop.xlane.xlu0 %932 }
 0x2a3   : > { %v975_v20 = vsub.f32 %v1795_v14, %v933_v16 }
 0x2a4   : > { %1593 = vrot.lane.b32.xlu0 %v2549_v44, %s2024_s22 }
 0x2a5   : > { %1395 = vrot.lane.b32.xlu1 %v2573_v49, %s2027_s26  ;;  %1664 = vst.msk [vmem:[%s2532_s30 + $0x10] sm:$0xff] %vm1661_vm4, %v975_v20 }
 0x2a6   : > { %v2608_v51 = vpop.permute.xlu0 %1061 }
 0x2a9   : > { %1467 = vrot.lane.b32.xlu1 %v2563_v47, %s2023_s21 }
 0x2aa   : > { %v1134_v25 = vpop.permute.xlu0 %1133 }
 0x2ab   : > { %v1181_v40 = vmul.f32 %v1134_v25, %v1101_v34  ;;  %v1022_v25 = vmul.f32 %v2476_v4, %v2255_v43 }
 0x2ad   : > { %1523 = vrot.lane.b32.xlu1 %v2573_v49, %s2028_s27  ;;  %v1245_v7 = vadd.f32 %v2498_v8, %v1181_v40  ;;  %v1102_v8 = vadd.f32 %v2504_v9, %v1022_v25  ;;  %v997_v9 = vmul.f32 1.442695, %v2445_v58  ;;  %v2667_v58 = vadd.f32 %v2347_v28, %v2381_v23 }
 0x2ae   : > { %v2619_v33 = vpop.permute.xlu0 %1205 }
 0x2af   : > { %1974 = vpow2.f32 %v997_v9 }
 0x2b1   : > { %1595 = vrot.lane.b32.xlu1 %v2563_v47, %s2024_s22 }
 0x2b2   : > { %v1262_v14 = vpop.permute.xlu0 %1261 }
 0x2b3   : > { %v1309_v54 = vmul.f32 %v1262_v14, %v1245_v7  ;;  %v943_v14 = vsel %vm924_vm3, %v2549_v44, 0.0 }
 0x2b4   : > { %v936_v16 = vpop.xlane.xlu1 %935 }
 0x2b5   : > { %v976_v20 = vsub.f32 %v1796_v52, %v936_v16  ;;  %v1373_v27 = vadd.f32 %v2510_v10, %v1309_v54 }
 0x2b6   : > { %v2629_v39 = vpop.permute.xlu0 %1333 }
 0x2b7   : > { %1665 = vst.msk [vmem:[%s2532_s30 + $0x18] sm:$0xff] %vm1661_vm4, %v976_v20 }
 0x2b8   : > { %v2631_v62 = vpop.permute.xlu1 %1063 }
 0x2ba   : > { %v1390_v6 = vpop.permute.xlu0 %1389 }
 0x2bb   : > { %v1437_v29 = vmul.f32 %v1390_v6, %v1373_v27 }
 0x2bc   : > { %v1136_v5 = vpop.permute.xlu1 %1135 }
 0x2bd   : > { %v1501_v40 = vadd.f32 %v2516_v12, %v1437_v29  ;;  %v1182_v7 = vmul.f32 %v1136_v5, %v1102_v8 }
 0x2be   : > { %v2636_v31 = vpop.permute.xlu0 %1461 }
 0x2bf   : > { %v1246_v4 = vadd.f32 %v2514_v11, %v1182_v7  ;;  %v946_v11 = vsel %vm924_vm3, %v2563_v47, 0.0 }
 0x2c0   : > { %v2638_v34 = vpop.permute.xlu1 %1207 }
 0x2c2   : > { %v1518_v52 = vpop.permute.xlu0 %1517 }
 0x2c3   : > { %v1565_v16 = vmul.f32 %v1518_v52, %v1501_v40  ;;  %944 = vadd.xlane.f32.xlu0 %v943_v14  ;;  %v999_v40 = vmul.f32 1.442695, %v2468_v2  ;;  %v2681_v2 = vadd.f32 %v2347_v28, %v2385_v26  ;;  %v419_v26 = vmul.f32 -0.5, %v2434_v53 }
 0x2c4   : > { %v1264_v10 = vpop.permute.xlu1 %1263 }
 0x2c5   : > { %v1629_v43 = vadd.f32 %v2524_v15, %v1565_v16  ;;  %v1310_v29 = vmul.f32 %v1264_v10, %v1246_v4  ;;  %1976 = vpow2.f32 %v999_v40  ;;  %v1023_v16 = vmul.f32 %v2553_v46, %v2252_v42  ;;  %v1998_v40 = vld [vmem:[%s2243_s11 + $0x18] sm:$0xff] }
 0x2c6   : > { %v420_v10 = vmul.f32 -0.5, %v2442_v57 }
 0x2c7   : > { %1645 = vst.msk [vmem:[%s2648_s9] sm:$0xff] %vm366_vm1, %v1629_v43  ;;  %v1374_v20 = vadd.f32 %v2520_v13, %v1310_v29  ;;  %v2673_v13 = vpop.eup %1974  ;;  %v1103_v4 = vadd.f32 %v2569_v19, %v1023_v16 }
 0x2c8   : > { %v2654_v5 = vpop.permute.xlu1 %1335 }
 0x2cc   : > { %v1392_v12 = vpop.permute.xlu1 %1391 }
 0x2cd   : > { %v1438_v54 = vmul.f32 %v1392_v12, %v1374_v20  ;;  %v1798_v12 = vadd.f32 -3.675754, %v420_v10  ;;  %v949_v10 = vsel %vm924_vm3, %v2667_v58, 0.0 }
 0x2cf   : > { %v1502_v27 = vadd.f32 %v2526_v17, %v1438_v54  ;;  %v2702_v17 = vpop.permute.xlu0 %1589 }
 0x2d0   : > { %v2658_v6 = vpop.permute.xlu1 %1463 }
 0x2d2   : > { %v2687_v23 = vpop.eup %1976 }
 0x2d4   : > { %v1520_v15 = vpop.permute.xlu1 %1519 }
 0x2d5   : > { %v1566_v25 = vmul.f32 %v1520_v15, %v1502_v27  ;;  %947 = vadd.xlane.f32.xlu1 %v946_v11 }
 0x2d7   : > { %v1630_v8 = vadd.f32 %v2537_v24, %v1566_v25  ;;  %v1797_v24 = vadd.f32 -3.675754, %v419_v26  ;;  %v1024_v26 = vmul.f32 %v1998_v40, %v2573_v49 }
 0x2d8   : > { %v2726_v29 = vpop.permute.xlu1 %1591 }
 0x2d9   : > { %1646 = vst.msk [vmem:[%s2648_s9 + $0x8] sm:$0xff] %vm366_vm1, %v1630_v8  ;;  %1069 = vrot.lane.b32.xlu0 %v2667_v58, %s2020_s18 }
 0x2dd   : > { %1141 = vrot.lane.b32.xlu0 %v2673_v13, %s2025_s23 }
 0x2e1   : > { %1213 = vrot.lane.b32.xlu0 %v2667_v58, %s2021_s19 }
 0x2e5   : > { %1269 = vrot.lane.b32.xlu0 %v2673_v13, %s2026_s25 }
 0x2e6   : > { %1071 = vrot.lane.b32.xlu1 %v2681_v2, %s2020_s18 }
 0x2e9   : > { %1341 = vrot.lane.b32.xlu0 %v2667_v58, %s2022_s20 }
 0x2ea   : > { %1143 = vrot.lane.b32.xlu1 %v2687_v23, %s2025_s23 }
 0x2ed   : > { %1397 = vrot.lane.b32.xlu0 %v2673_v13, %s2027_s26 }
 0x2ee   : > { %1215 = vrot.lane.b32.xlu1 %v2681_v2, %s2021_s19 }
 0x2f1   : > { %1469 = vrot.lane.b32.xlu0 %v2667_v58, %s2023_s21 }
 0x2f2   : > { %1271 = vrot.lane.b32.xlu1 %v2687_v23, %s2026_s25 }
 0x2f5   : > { %1525 = vrot.lane.b32.xlu0 %v2673_v13, %s2028_s27 }
 0x2f6   : > { %1343 = vrot.lane.b32.xlu1 %v2681_v2, %s2022_s20 }
 0x2f7   : > { %v939_v7 = vpop.xlane.xlu0 %938 }
 0x2f8   : > { %v977_v52 = vsub.f32 %v1797_v24, %v939_v7 }
 0x2f9   : > { %1597 = vrot.lane.b32.xlu0 %v2667_v58, %s2024_s22 }
 0x2fa   : > { %1399 = vrot.lane.b32.xlu1 %v2687_v23, %s2027_s26  ;;  %1666 = vst.msk [vmem:[%s2532_s30 + $0x20] sm:$0xff] %vm1661_vm4, %v977_v52 }
 0x2fb   : > { %v2714_v53 = vpop.permute.xlu0 %1065 }
 0x2fe   : > { %1471 = vrot.lane.b32.xlu1 %v2681_v2, %s2023_s21 }
 0x2ff   : > { %v1138_v14 = vpop.permute.xlu0 %1137 }
 0x300   : > { %v1183_v9 = vmul.f32 %v1138_v14, %v1103_v4 }
 0x302   : > { %1527 = vrot.lane.b32.xlu1 %v2687_v23, %s2028_s27  ;;  %v1247_v15 = vadd.f32 %v2557_v38, %v1183_v9  ;;  %v1104_v38 = vadd.f32 %v2579_v21, %v1024_v26 }
 0x303   : > { %v2723_v43 = vpop.permute.xlu0 %1209 }
 0x306   : > { %1599 = vrot.lane.b32.xlu1 %v2681_v2, %s2024_s22 }
 0x307   : > { %v1266_v20 = vpop.permute.xlu0 %1265 }
 0x308   : > { %v1311_v57 = vmul.f32 %v1266_v20, %v1247_v15 }
 0x309   : > { %v942_v54 = vpop.xlane.xlu1 %941 }
 0x30a   : > { %v978_v27 = vsub.f32 %v1798_v12, %v942_v54  ;;  %v1375_v11 = vadd.f32 %v2571_v48, %v1311_v57 }
 0x30b   : > { %v2733_v42 = vpop.permute.xlu0 %1337 }
 0x30c   : > { %1667 = vst.msk [vmem:[%s2532_s30 + $0x28] sm:$0xff] %vm1661_vm4, %v978_v27 }
 0x30d   : > { %v2735_v46 = vpop.permute.xlu1 %1067 }
 0x30f   : > { %v1394_v19 = vpop.permute.xlu0 %1393 }
 0x310   : > { %v1439_v8 = vmul.f32 %v1394_v19, %v1375_v11 }
 0x311   : > { %v1140_v25 = vpop.permute.xlu1 %1139 }
 0x312   : > { %v1503_v52 = vadd.f32 %v2581_v50, %v1439_v8  ;;  %v1184_v14 = vmul.f32 %v1140_v25, %v1104_v38  ;;  %v1001_v50 = vmul.f32 1.442695, %v2549_v44  ;;  %v1003_v25 = vmul.f32 1.442695, %v2563_v47  ;;  %v1999_v38 = vld [vmem:[%s2243_s11 + $0x20] sm:$0xff] }
 0x313   : > { %v2740_v24 = vpop.permute.xlu0 %1465  ;;  %v2765_v44 = vadd.f32 %v2347_v28, %v2387_v30  ;;  %v2779_v47 = vadd.f32 %v2347_v28, %v2389_v32  ;;  %v421_v32 = vmul.f32 -0.5, %v2438_v55 }
 0x314   : > { %v1248_v49 = vadd.f32 %v2592_v56, %v1184_v14  ;;  %1978 = vpow2.f32 %v1001_v50  ;;  %v952_v56 = vsel %vm924_vm3, %v2681_v2, 0.0  ;;  %v422_v14 = vmul.f32 -0.5, %v2452_v61 }
 0x315   : > { %v2742_v7 = vpop.permute.xlu1 %1211  ;;  %1980 = vpow2.f32 %v1003_v25 }
 0x317   : > { %v1522_v16 = vpop.permute.xlu0 %1521 }
 0x318   : > { %v1567_v48 = vmul.f32 %v1522_v16, %v1503_v52  ;;  %950 = vadd.xlane.f32.xlu0 %v949_v10  ;;  %v1025_v52 = vmul.f32 %v1999_v38, %v2673_v13 }
 0x319   : > { %v1268_v4 = vpop.permute.xlu1 %1267 }
 0x31a   : > { %v1631_v9 = vadd.f32 %v2594_v59, %v1567_v48  ;;  %v1312_v21 = vmul.f32 %v1268_v4, %v1248_v49  ;;  %v1105_v10 = vadd.f32 %v2608_v51, %v1025_v52 }
 0x31c   : > { %1647 = vst.msk [vmem:[%s2648_s9 + $0x10] sm:$0xff] %vm366_vm1, %v1631_v9  ;;  %v1376_v54 = vadd.f32 %v2600_v18, %v1312_v21  ;;  %v1800_v9 = vadd.f32 -3.675754, %v422_v14 }
 0x31d   : > { %v2752_v12 = vpop.permute.xlu1 %1339 }
 0x321   : > { %v1396_v20 = vpop.permute.xlu1 %1395  ;;  %v2771_v18 = vpop.eup %1978 }
 0x322   : > { %v1440_v27 = vmul.f32 %v1396_v20, %v1376_v54  ;;  %v2785_v30 = vpop.eup %1980 }
 0x324   : > { %v1504_v57 = vadd.f32 %v2612_v22, %v1440_v27  ;;  %v2800_v22 = vpop.permute.xlu0 %1593 }
 0x325   : > { %v2756_v15 = vpop.permute.xlu1 %1467 }
 0x329   : > { %v1524_v59 = vpop.permute.xlu1 %1523 }
 0x32a   : > { %v1568_v19 = vmul.f32 %v1524_v59, %v1504_v57  ;;  %953 = vadd.xlane.f32.xlu1 %v952_v56  ;;  %v2000_v56 = vld [vmem:[%s2243_s11 + $0x28] sm:$0xff] }
 0x32c   : > { %v1632_v11 = vadd.f32 %v2622_v36, %v1568_v19  ;;  %v1799_v36 = vadd.f32 -3.675754, %v421_v32  ;;  %v1026_v19 = vmul.f32 %v2000_v56, %v2687_v23  ;;  %v424_v56 = vmul.f32 -0.5, %v2460_v0 }
 0x32d   : > { %v2824_v48 = vpop.permute.xlu1 %1595 }
 0x32e   : > { %1648 = vst.msk [vmem:[%s2648_s9 + $0x18] sm:$0xff] %vm366_vm1, %v1632_v11  ;;  %1073 = vrot.lane.b32.xlu0 %v2765_v44, %s2020_s18 }
 0x332   : > { %1145 = vrot.lane.b32.xlu0 %v2771_v18, %s2025_s23 }
 0x336   : > { %1217 = vrot.lane.b32.xlu0 %v2765_v44, %s2021_s19 }
 0x33a   : > { %1273 = vrot.lane.b32.xlu0 %v2771_v18, %s2026_s25 }
 0x33b   : > { %1075 = vrot.lane.b32.xlu1 %v2779_v47, %s2020_s18 }
 0x33e   : > { %1345 = vrot.lane.b32.xlu0 %v2765_v44, %s2022_s20 }
 0x33f   : > { %1147 = vrot.lane.b32.xlu1 %v2785_v30, %s2025_s23 }
 0x342   : > { %1401 = vrot.lane.b32.xlu0 %v2771_v18, %s2027_s26 }
 0x343   : > { %1219 = vrot.lane.b32.xlu1 %v2779_v47, %s2021_s19 }
 0x346   : > { %1473 = vrot.lane.b32.xlu0 %v2765_v44, %s2023_s21 }
 0x347   : > { %1275 = vrot.lane.b32.xlu1 %v2785_v30, %s2026_s25 }
 0x34a   : > { %1529 = vrot.lane.b32.xlu0 %v2771_v18, %s2028_s27 }
 0x34b   : > { %1347 = vrot.lane.b32.xlu1 %v2779_v47, %s2022_s20 }
 0x34c   : > { %v945_v8 = vpop.xlane.xlu0 %944 }
 0x34d   : > { %v979_v40 = vsub.f32 %v1799_v36, %v945_v8 }
 0x34e   : > { %1601 = vrot.lane.b32.xlu0 %v2765_v44, %s2024_s22 }
 0x34f   : > { %1403 = vrot.lane.b32.xlu1 %v2785_v30, %s2027_s26  ;;  %1668 = vst.msk [vmem:[%s2532_s30 + $0x30] sm:$0xff] %vm1661_vm4, %v979_v40  ;;  %v955_v40 = vsel %vm924_vm3, %v2765_v44, 0.0 }
 0x350   : > { %v2812_v55 = vpop.permute.xlu0 %1069 }
 0x353   : > { %1475 = vrot.lane.b32.xlu1 %v2779_v47, %s2023_s21 }
 0x354   : > { %v1142_v26 = vpop.permute.xlu0 %1141 }
 0x355   : > { %v1185_v4 = vmul.f32 %v1142_v26, %v1105_v10 }
 0x357   : > { %1531 = vrot.lane.b32.xlu1 %v2785_v30, %s2028_s27  ;;  %v1249_v20 = vadd.f32 %v2619_v33, %v1185_v4  ;;  %v1106_v33 = vadd.f32 %v2631_v62, %v1026_v19 }
 0x358   : > { %v2821_v16 = vpop.permute.xlu0 %1213 }
 0x35b   : > { %1603 = vrot.lane.b32.xlu1 %v2779_v47, %s2024_s22 }
 0x35c   : > { %v1270_v49 = vpop.permute.xlu0 %1269 }
 0x35d   : > { %v1313_v13 = vmul.f32 %v1270_v49, %v1249_v20  ;;  %v1007_v20 = vmul.f32 1.442695, %v2681_v2 }
 0x35e   : > { %v948_v21 = vpop.xlane.xlu1 %947 }
 0x35f   : > { %v980_v50 = vsub.f32 %v1800_v9, %v948_v21  ;;  %v1377_v27 = vadd.f32 %v2629_v39, %v1313_v13 }
 0x360   : > { %v2831_v61 = vpop.permute.xlu0 %1341 }
 0x361   : > { %1669 = vst.msk [vmem:[%s2532_s30 + $0x38] sm:$0xff] %vm1661_vm4, %v980_v50 }
 0x362   : > { %v2833_v54 = vpop.permute.xlu1 %1071 }
 0x364   : > { %v1398_v51 = vpop.permute.xlu0 %1397 }
 0x365   : > { %v1441_v59 = vmul.f32 %v1398_v51, %v1377_v27 }
 0x366   : > { %v1144_v57 = vpop.permute.xlu1 %1143 }
 0x367   : > { %v1505_v32 = vadd.f32 %v2636_v31, %v1441_v59  ;;  %v1186_v36 = vmul.f32 %v1144_v57, %v1106_v33  ;;  %v1005_v31 = vmul.f32 1.442695, %v2667_v58  ;;  %v2863_v58 = vadd.f32 %v2347_v28, %v2393_v35  ;;  %v2001_v57 = vld [vmem:[%s2243_s11 + $0x30] sm:$0xff] }
 0x368   : > { %v2838_v11 = vpop.permute.xlu0 %1469  ;;  %v1027_v59 = vmul.f32 %v2001_v57, %v2771_v18 }
 0x369   : > { %v1250_v23 = vadd.f32 %v2638_v34, %v1186_v36  ;;  %1982 = vpow2.f32 %v1005_v31  ;;  %v958_v34 = vsel %vm924_vm3, %v2779_v47, 0.0 }
 0x36a   : > { %v2840_v25 = vpop.permute.xlu1 %1215  ;;  %1984 = vpow2.f32 %v1007_v20  ;;  %v1107_v33 = vadd.f32 %v2714_v53, %v1027_v59  ;;  %v961_v20 = vsel %vm924_vm3, %v2863_v58, 0.0 }
 0x36c   : > { %v1526_v8 = vpop.permute.xlu0 %1525 }
 0x36d   : > { %v1569_v39 = vmul.f32 %v1526_v8, %v1505_v32  ;;  %956 = vadd.xlane.f32.xlu0 %v955_v40  ;;  %v1802_v8 = vadd.f32 -3.675754, %v424_v56 }
 0x36e   : > { %v1272_v26 = vpop.permute.xlu1 %1271 }
 0x36f   : > { %v1633_v38 = vadd.f32 %v2702_v17, %v1569_v39  ;;  %v1314_v62 = vmul.f32 %v1272_v26, %v1250_v23 }
 0x370   : > { %v2898_v2 = vpop.permute.xlu0 %1597 }
 0x371   : > { %1649 = vst.msk [vmem:[%s2648_s9 + $0x20] sm:$0xff] %vm366_vm1, %v1633_v38  ;;  %v1378_v10 = vadd.f32 %v2654_v5, %v1314_v62 }
 0x372   : > { %v2850_v52 = vpop.permute.xlu1 %1343 }
 0x376   : > { %v1400_v14 = vpop.permute.xlu1 %1399  ;;  %v2869_v5 = vpop.eup %1982 }
 0x377   : > { %v1442_v4 = vmul.f32 %v1400_v14, %v1378_v10  ;;  %v2883_v35 = vpop.eup %1984  ;;  %v2002_v10 = vld [vmem:[%s2243_s11 + $0x38] sm:$0xff] }
 0x379   : > { %v1506_v49 = vadd.f32 %v2658_v6, %v1442_v4  ;;  %v2877_v6 = vadd.f32 %v2347_v28, %v2395_v37  ;;  %v423_v37 = vmul.f32 -0.5, %v2448_v60  ;;  %v1028_v4 = vmul.f32 %v2002_v10, %v2785_v30 }
 0x37a   : > { %v2854_v9 = vpop.permute.xlu1 %1471 }
 0x37e   : > { %v1528_v17 = vpop.permute.xlu1 %1527 }
 0x37f   : > { %v1570_v21 = vmul.f32 %v1528_v17, %v1506_v49  ;;  %959 = vadd.xlane.f32.xlu1 %v958_v34 }
 0x381   : > { %v1634_v50 = vadd.f32 %v2726_v29, %v1570_v21  ;;  %v1801_v29 = vadd.f32 -3.675754, %v423_v37 }
 0x382   : > { %v2922_v32 = vpop.permute.xlu1 %1599 }
 0x383   : > { %1650 = vst.msk [vmem:[%s2648_s9 + $0x28] sm:$0xff] %vm366_vm1, %v1634_v50  ;;  %1077 = vrot.lane.b32.xlu0 %v2863_v58, %s2020_s18 }
 0x387   : > { %1149 = vrot.lane.b32.xlu0 %v2869_v5, %s2025_s23 }
 0x38b   : > { %1221 = vrot.lane.b32.xlu0 %v2863_v58, %s2021_s19 }
 0x38f   : > { %1277 = vrot.lane.b32.xlu0 %v2869_v5, %s2026_s25 }
 0x390   : > { %1079 = vrot.lane.b32.xlu1 %v2877_v6, %s2020_s18 }
 0x393   : > { %1349 = vrot.lane.b32.xlu0 %v2863_v58, %s2022_s20 }
 0x394   : > { %1151 = vrot.lane.b32.xlu1 %v2883_v35, %s2025_s23 }
 0x397   : > { %1405 = vrot.lane.b32.xlu0 %v2869_v5, %s2027_s26 }
 0x398   : > { %1223 = vrot.lane.b32.xlu1 %v2877_v6, %s2021_s19 }
 0x39b   : > { %1477 = vrot.lane.b32.xlu0 %v2863_v58, %s2023_s21 }
 0x39c   : > { %1279 = vrot.lane.b32.xlu1 %v2883_v35, %s2026_s25 }
 0x39f   : > { %1533 = vrot.lane.b32.xlu0 %v2869_v5, %s2028_s27 }
 0x3a0   : > { %1351 = vrot.lane.b32.xlu1 %v2877_v6, %s2022_s20 }
 0x3a1   : > { %v951_v13 = vpop.xlane.xlu0 %950 }
 0x3a2   : > { %v981_v51 = vsub.f32 %v1801_v29, %v951_v13 }
 0x3a3   : > { %1605 = vrot.lane.b32.xlu0 %v2863_v58, %s2024_s22 }
 0x3a4   : > { %1407 = vrot.lane.b32.xlu1 %v2883_v35, %s2027_s26  ;;  %1670 = vst.msk [vmem:[%s2532_s30 + $0x40] sm:$0xff] %vm1661_vm4, %v981_v51 }
 0x3a5   : > { %v2910_v60 = vpop.permute.xlu0 %1073 }
 0x3a8   : > { %1479 = vrot.lane.b32.xlu1 %v2877_v6, %s2023_s21 }
 0x3a9   : > { %v1146_v27 = vpop.permute.xlu0 %1145 }
 0x3aa   : > { %v1187_v36 = vmul.f32 %v1146_v27, %v1107_v33 }
 0x3ac   : > { %1535 = vrot.lane.b32.xlu1 %v2883_v35, %s2028_s27  ;;  %v1251_v38 = vadd.f32 %v2723_v43, %v1187_v36  ;;  %v1108_v43 = vadd.f32 %v2735_v46, %v1028_v4 }
 0x3ad   : > { %v2919_v19 = vpop.permute.xlu0 %1217 }
 0x3b0   : > { %1607 = vrot.lane.b32.xlu1 %v2877_v6, %s2024_s22 }
 0x3b1   : > { %v1274_v40 = vpop.permute.xlu0 %1273 }
 0x3b2   : > { %v1315_v18 = vmul.f32 %v1274_v40, %v1251_v38 }
 0x3b3   : > { %v954_v39 = vpop.xlane.xlu1 %953 }
 0x3b4   : > { %v982_v26 = vsub.f32 %v1802_v8, %v954_v39  ;;  %v1379_v62 = vadd.f32 %v2733_v42, %v1315_v18  ;;  %v1011_v8 = vmul.f32 1.442695, %v2779_v47  ;;  %v426_v18 = vmul.f32 -0.5, %v2474_v3 }
 0x3b5   : > { %v2929_v0 = vpop.permute.xlu0 %1345 }
 0x3b6   : > { %1671 = vst.msk [vmem:[%s2532_s30 + $0x48] sm:$0xff] %vm1661_vm4, %v982_v26  ;;  %v2003_v26 = vld [vmem:[%s2243_s11 + $0x40] sm:$0xff]  ;;  %v1804_v10 = vadd.f32 -3.675754, %v426_v18  ;;  %v427_v18 = vmul.f32 -0.5, %v2464_v1 }
 0x3b7   : > { %v2931_v23 = vpop.permute.xlu1 %1075  ;;  %v1029_v38 = vmul.f32 %v2003_v26, %v2869_v5 }
 0x3b9   : > { %v1402_v53 = vpop.permute.xlu0 %1401 }
 0x3ba   : > { %v1443_v14 = vmul.f32 %v1402_v53, %v1379_v62  ;;  %v1109_v62 = vadd.f32 %v2812_v55, %v1029_v38 }
 0x3bb   : > { %v1148_v31 = vpop.permute.xlu1 %1147 }
 0x3bc   : > { %v1507_v34 = vadd.f32 %v2740_v24, %v1443_v14  ;;  %v1188_v21 = vmul.f32 %v1148_v31, %v1108_v43  ;;  %v1009_v24 = vmul.f32 1.442695, %v2765_v44  ;;  %v2961_v44 = vadd.f32 %v2347_v28, %v2400_v41 }
 0x3bd   : > { %v2936_v49 = vpop.permute.xlu0 %1473 }
 0x3be   : > { %v1252_v30 = vadd.f32 %v2742_v7, %v1188_v21  ;;  %1986 = vpow2.f32 %v1009_v24  ;;  %v964_v7 = vsel %vm924_vm3, %v2877_v6, 0.0 }
 0x3bf   : > { %v2938_v17 = vpop.permute.xlu1 %1219  ;;  %1988 = vpow2.f32 %v1011_v8 }
 0x3c1   : > { %v1530_v50 = vpop.permute.xlu0 %1529 }
 0x3c2   : > { %v1571_v42 = vmul.f32 %v1530_v50, %v1507_v34  ;;  %962 = vadd.xlane.f32.xlu0 %v961_v20 }
 0x3c3   : > { %v1276_v37 = vpop.permute.xlu1 %1275 }
 0x3c4   : > { %v1635_v29 = vadd.f32 %v2800_v22, %v1571_v42  ;;  %v1316_v46 = vmul.f32 %v1276_v37, %v1252_v30 }
 0x3c6   : > { %1651 = vst.msk [vmem:[%s2648_s9 + $0x30] sm:$0xff] %vm366_vm1, %v1635_v29  ;;  %v1380_v27 = vadd.f32 %v2752_v12, %v1316_v46  ;;  %v2004_v29 = vld [vmem:[%s2243_s11 + $0x48] sm:$0xff] }
 0x3c7   : > { %v2948_v13 = vpop.permute.xlu1 %1347  ;;  %v1030_v30 = vmul.f32 %v2004_v29, %v2883_v35 }
 0x3cb   : > { %v1404_v51 = vpop.permute.xlu1 %1403  ;;  %v2967_v12 = vpop.eup %1986 }
 0x3cc   : > { %v1444_v57 = vmul.f32 %v1404_v51, %v1380_v27  ;;  %v2981_v41 = vpop.eup %1988  ;;  %v1110_v51 = vadd.f32 %v2833_v54, %v1030_v30 }
 0x3ce   : > { %v1508_v56 = vadd.f32 %v2756_v15, %v1444_v57  ;;  %v2975_v15 = vadd.f32 %v2347_v28, %v2404_v45  ;;  %v425_v28 = vmul.f32 -0.5, %v2456_v63  ;;  %v2996_v45 = vpop.permute.xlu0 %1601 }
 0x3cf   : > { %v2952_v59 = vpop.permute.xlu1 %1475 }
 0x3d0   : > { %v1803_v47 = vadd.f32 -3.675754, %v425_v28 }
 0x3d3   : > { %v1532_v22 = vpop.permute.xlu1 %1531 }
 0x3d4   : > { %v1572_v33 = vmul.f32 %v1532_v22, %v1508_v56  ;;  %965 = vadd.xlane.f32.xlu1 %v964_v7  ;;  %v1013_v56 = vmul.f32 1.442695, %v2863_v58 }
 0x3d6   : > { %v1636_v36 = vadd.f32 %v2824_v48, %v1572_v33  ;;  %1990 = vpow2.f32 %v1013_v56 }
 0x3d7   : > { %v3018_v31 = vpop.permute.xlu1 %1603 }
 0x3d8   : > { %1652 = vst.msk [vmem:[%s2648_s9 + $0x38] sm:$0xff] %vm366_vm1, %v1636_v36  ;;  %1081 = vrot.lane.b32.xlu0 %v2961_v44, %s2020_s18 }
 0x3dc   : > { %1153 = vrot.lane.b32.xlu0 %v2967_v12, %s2025_s23 }
 0x3e0   : > { %1225 = vrot.lane.b32.xlu0 %v2961_v44, %s2021_s19 }
 0x3e4   : > { %1281 = vrot.lane.b32.xlu0 %v2967_v12, %s2026_s25 }
 0x3e5   : > { %1083 = vrot.lane.b32.xlu1 %v2975_v15, %s2020_s18 }
 0x3e8   : > { %1353 = vrot.lane.b32.xlu0 %v2961_v44, %s2022_s20 }
 0x3e9   : > { %1155 = vrot.lane.b32.xlu1 %v2981_v41, %s2025_s23 }
 0x3ec   : > { %1409 = vrot.lane.b32.xlu0 %v2967_v12, %s2027_s26 }
 0x3ed   : > { %1227 = vrot.lane.b32.xlu1 %v2975_v15, %s2021_s19 }
 0x3f0   : > { %1481 = vrot.lane.b32.xlu0 %v2961_v44, %s2023_s21 }
 0x3f1   : > { %1283 = vrot.lane.b32.xlu1 %v2981_v41, %s2026_s25 }
 0x3f4   : > { %1537 = vrot.lane.b32.xlu0 %v2967_v12, %s2028_s27 }
 0x3f5   : > { %1355 = vrot.lane.b32.xlu1 %v2975_v15, %s2022_s20 }
 0x3f6   : > { %v957_v48 = vpop.xlane.xlu0 %956 }
 0x3f7   : > { %v983_v40 = vsub.f32 %v1803_v47, %v957_v48  ;;  %v1015_v47 = vmul.f32 1.442695, %v2877_v6  ;;  %v1017_v48 = vmul.f32 1.442695, %v2961_v44 }
 0x3f9   : > { %1411 = vrot.lane.b32.xlu1 %v2981_v41, %s2027_s26  ;;  %1672 = vst.msk [vmem:[%s2532_s30 + $0x50] sm:$0xff] %vm1661_vm4, %v983_v40  ;;  %1992 = vpow2.f32 %v1015_v47 }
 0x3fa   : > { %v3006_v39 = vpop.permute.xlu0 %1077  ;;  %1994 = vpow2.f32 %v1017_v48 }
 0x3fd   : > { %1483 = vrot.lane.b32.xlu1 %v2975_v15, %s2023_s21 }
 0x3fe   : > { %v1150_v63 = vpop.permute.xlu0 %1149 }
 0x3ff   : > { %v1189_v14 = vmul.f32 %v1150_v63, %v1109_v62  ;;  %v3053_v63 = vpop.eup %1990 }
 0x401   : > { %1539 = vrot.lane.b32.xlu1 %v2981_v41, %s2028_s27  ;;  %v1253_v21 = vadd.f32 %v2821_v16, %v1189_v14  ;;  %v967_v16 = vsel %vm924_vm3, %v2961_v44, 0.0  ;;  %v1805_v14 = vadd.f32 -3.675754, %v427_v18 }
 0x402   : > { %v3015_v53 = vpop.permute.xlu0 %1221 }
 0x406   : > { %v1278_v4 = vpop.permute.xlu0 %1277  ;;  %v3065_v6 = vpop.eup %1992 }
 0x407   : > { %v1317_v5 = vmul.f32 %v1278_v4, %v1253_v21  ;;  %v3199_v21 = vld [vmem:[#allocation3_spill] sm:$0xff] }
 0x408   : > { %v960_v43 = vpop.xlane.xlu1 %959 }
 0x409   : > { %v984_v34 = vsub.f32 %v1804_v10, %v960_v43  ;;  %v1381_v55 = vadd.f32 %v2831_v61, %v1317_v5  ;;  %v428_v5 = vmul.f32 -0.5, %v3199_v21 }
 0x40a   : > { %v3023_v50 = vpop.permute.xlu0 %1349 }
 0x40b   : > { %1673 = vst.msk [vmem:[%s2532_s30 + $0x58] sm:$0xff] %vm1661_vm4, %v984_v34  ;;  %v2005_v34 = vld [vmem:[%s2243_s11 + $0x50] sm:$0xff]  ;;  %v1806_v29 = vadd.f32 -3.675754, %v428_v5 }
 0x40c   : > { %v3025_v3 = vpop.permute.xlu1 %1079 }
 0x40e   : > { %v1406_v20 = vpop.permute.xlu0 %1405 }
 0x40f   : > { %v1445_v37 = vmul.f32 %v1406_v20, %v1381_v55 }
 0x410   : > { %v1152_v42 = vpop.permute.xlu1 %1151 }
 0x411   : > { %v1509_v27 = vadd.f32 %v2838_v11, %v1445_v37  ;;  %v1190_v57 = vmul.f32 %v1152_v42, %v1110_v51 }
 0x412   : > { %v3030_v46 = vpop.permute.xlu0 %1477 }
 0x413   : > { %968 = vadd.xlane.f32.xlu0 %v967_v16  ;;  %v1254_v33 = vadd.f32 %v2840_v25, %v1190_v57 }
 0x414   : > { %v3034_v24 = vpop.permute.xlu1 %1223 }
 0x416   : > { %v1534_v61 = vpop.permute.xlu0 %1533 }
 0x417   : > { %v1573_v22 = vmul.f32 %v1534_v61, %v1509_v27 }
 0x418   : > { %v1280_v7 = vpop.permute.xlu1 %1279 }
 0x419   : > { %v1637_v35 = vadd.f32 %v2898_v2, %v1573_v22  ;;  %v1318_v8 = vmul.f32 %v1280_v7, %v1254_v33  ;;  %v970_v2 = vsel %vm924_vm3, %v2975_v15, 0.0  ;;  %v2006_v7 = vld [vmem:[%s2243_s11 + $0x58] sm:$0xff] }
 0x41a   : > { %v3092_v62 = vpop.permute.xlu0 %1605 }
 0x41b   : > { %1653 = vst.msk [vmem:[%s2648_s9 + $0x40] sm:$0xff] %vm366_vm1, %v1637_v35  ;;  %v1382_v54 = vadd.f32 %v2850_v52, %v1318_v8  ;;  %v1032_v35 = vmul.f32 %v2006_v7, %v2981_v41 }
 0x41c   : > { %v3043_v36 = vpop.permute.xlu1 %1351 }
 0x420   : > { %v1408_v28 = vpop.permute.xlu1 %1407 }
 0x421   : > { %v1446_v11 = vmul.f32 %v1408_v28, %v1382_v54 }
 0x423   : > { %v1510_v25 = vadd.f32 %v2854_v9, %v1446_v11  ;;  %v1019_v9 = vmul.f32 1.442695, %v2975_v15 }
 0x424   : > { %v3047_v58 = vpop.permute.xlu1 %1479 }
 0x425   : > { %971 = vadd.xlane.f32.xlu1 %v970_v2  ;;  %1996 = vpow2.f32 %v1019_v9 }
 0x428   : > { %v1536_v40 = vpop.permute.xlu1 %1535 }
 0x429   : > { %v1574_v26 = vmul.f32 %v1536_v40, %v1510_v25  ;;  %1157 = vrot.lane.b32.xlu0 %v3053_v63, %s2025_s23 }
 0x42b   : > { %v1638_v52 = vadd.f32 %v2922_v32, %v1574_v26  ;;  %v3071_v32 = vpop.eup %1994 }
 0x42c   : > { %v3114_v42 = vpop.permute.xlu1 %1607 }
 0x42d   : > { %1654 = vst.msk [vmem:[%s2648_s9 + $0x48] sm:$0xff] %vm366_vm1, %v1638_v52  ;;  %1285 = vrot.lane.b32.xlu0 %v3053_v63, %s2026_s25 }
 0x431   : > { %1413 = vrot.lane.b32.xlu0 %v3053_v63, %s2027_s26 }
 0x432   : > { %v3085_v38 = vpop.eup %1996 }
 0x435   : > { %1541 = vrot.lane.b32.xlu0 %v3053_v63, %s2028_s27 }
 0x436   : > { %1159 = vrot.lane.b32.xlu1 %v3065_v6, %s2025_s23 }
 0x439   : > { %1161 = vrot.lane.b32.xlu0 %v3071_v32, %s2025_s23 }
 0x43a   : > { %1287 = vrot.lane.b32.xlu1 %v3065_v6, %s2026_s25 }
 0x43d   : > { %1289 = vrot.lane.b32.xlu0 %v3071_v32, %s2026_s25 }
 0x43e   : > { %1415 = vrot.lane.b32.xlu1 %v3065_v6, %s2027_s26 }
 0x441   : > { %1417 = vrot.lane.b32.xlu0 %v3071_v32, %s2027_s26 }
 0x442   : > { %1543 = vrot.lane.b32.xlu1 %v3065_v6, %s2028_s27 }
 0x445   : > { %1545 = vrot.lane.b32.xlu0 %v3071_v32, %s2028_s27 }
 0x446   : > { %1163 = vrot.lane.b32.xlu1 %v3085_v38, %s2025_s23 }
 0x449   : > { %1609 = vrot.lane.b32.xlu0 %v2961_v44, %s2024_s22  ;;  %v1031_v44 = vmul.f32 %v2005_v34, %v2967_v12 }
 0x44a   : > { %1291 = vrot.lane.b32.xlu1 %v3085_v38, %s2026_s25 }
 0x44b   : > { %v963_v10 = vpop.xlane.xlu0 %962  ;;  %v1111_v55 = vadd.f32 %v2910_v60, %v1031_v44 }
 0x44c   : > { %v985_v4 = vsub.f32 %v1805_v14, %v963_v10 }
 0x44e   : > { %1419 = vrot.lane.b32.xlu1 %v3085_v38, %s2027_s26  ;;  %1674 = vst.msk [vmem:[%s2532_s30 + $0x60] sm:$0xff] %vm1661_vm4, %v985_v4 }
 0x44f   : > { %v3102_v43 = vpop.permute.xlu0 %1081 }
 0x452   : > { %1547 = vrot.lane.b32.xlu1 %v3085_v38, %s2028_s27 }
 0x453   : > { %v1154_v1 = vpop.permute.xlu0 %1153 }
 0x454   : > { %v1191_v37 = vmul.f32 %v1154_v1, %v1111_v55  ;;  %v2007_v1 = vld [vmem:[%s2243_s11 + $0x60] sm:$0xff] }
 0x455   : > { %v1033_v34 = vmul.f32 %v2007_v1, %v3053_v63 }
 0x456   : > { %1611 = vrot.lane.b32.xlu1 %v2975_v15, %s2024_s22  ;;  %v1255_v27 = vadd.f32 %v2919_v19, %v1191_v37  ;;  %v1112_v19 = vadd.f32 %v2931_v23, %v1032_v35 }
 0x457   : > { %v3111_v20 = vpop.permute.xlu0 %1225  ;;  %v1113_v44 = vadd.f32 %v3006_v39, %v1033_v34 }
 0x45b   : > { %v1282_v30 = vpop.permute.xlu0 %1281 }
 0x45c   : > { %v1319_v12 = vmul.f32 %v1282_v30, %v1255_v27 }
 0x45d   : > { %v966_v16 = vpop.xlane.xlu1 %965 }
 0x45e   : > { %v986_v51 = vsub.f32 %v1806_v29, %v966_v16  ;;  %v1383_v60 = vadd.f32 %v2929_v0, %v1319_v12  ;;  %v3201_v29 = vld [vmem:[#allocation4_spill] sm:$0xff] }
 0x45f   : > { %v3119_v15 = vpop.permute.xlu0 %1353  ;;  %v430_v30 = vmul.f32 -0.5, %v3201_v29  ;;  %v2008_v12 = vld [vmem:[%s2243_s11 + $0x70] sm:$0xff] }
 0x460   : > { %1675 = vst.msk [vmem:[%s2532_s30 + $0x68] sm:$0xff] %vm1661_vm4, %v986_v51 }
 0x461   : > { %v3121_v57 = vpop.permute.xlu1 %1083  ;;  %v1808_v39 = vadd.f32 -3.675754, %v430_v30 }
 0x463   : > { %v1410_v61 = vpop.permute.xlu0 %1409 }
 0x464   : > { %v1447_v22 = vmul.f32 %v1410_v61, %v1383_v60  ;;  %v1035_v61 = vmul.f32 %v2008_v12, %v3071_v32 }
 0x465   : > { %v1156_v56 = vpop.permute.xlu1 %1155 }
 0x466   : > { %v1511_v28 = vadd.f32 %v2936_v49, %v1447_v22  ;;  %v1192_v54 = vmul.f32 %v1156_v56, %v1112_v19 }
 0x467   : > { %v3126_v33 = vpop.permute.xlu0 %1481 }
 0x468   : > { %v1256_v25 = vadd.f32 %v2938_v17, %v1192_v54  ;;  %v3200_v17 = vld [vmem:[#allocation2_spill] sm:$0xff] }
 0x469   : > { %v3128_v8 = vpop.permute.xlu1 %1227  ;;  %v429_v14 = vmul.f32 -0.5, %v3200_v17 }
 0x46b   : > { %v1538_v11 = vpop.permute.xlu0 %1537  ;;  %v1807_v10 = vadd.f32 -3.675754, %v429_v14 }
 0x46c   : > { %v1575_v47 = vmul.f32 %v1538_v11, %v1511_v28 }
 0x46d   : > { %v1284_v2 = vpop.permute.xlu1 %1283 }
 0x46e   : > { %v1639_v0 = vadd.f32 %v2996_v45, %v1575_v47  ;;  %v1320_v48 = vmul.f32 %v1284_v2, %v1256_v25 }
 0x470   : > { %1655 = vst.msk [vmem:[%s2648_s9 + $0x50] sm:$0xff] %vm366_vm1, %v1639_v0  ;;  %v1384_v23 = vadd.f32 %v2948_v13, %v1320_v48 }
 0x471   : > { %v3136_v41 = vpop.permute.xlu1 %1355 }
 0x475   : > { %v1412_v40 = vpop.permute.xlu1 %1411 }
 0x476   : > { %v1448_v49 = vmul.f32 %v1412_v40, %v1384_v23 }
 0x478   : > { %v1512_v52 = vadd.f32 %v2952_v59, %v1448_v49 }
 0x479   : > { %v3139_v26 = vpop.permute.xlu1 %1483 }
 0x47d   : > { %v1540_v9 = vpop.permute.xlu1 %1539 }
 0x47e   : > { %v1576_v18 = vmul.f32 %v1540_v9, %v1512_v52 }
 0x480   : > { %v1640_v45 = vadd.f32 %v3018_v31, %v1576_v18 }
 0x482   : > { %1656 = vst.msk [vmem:[%s2648_s9 + $0x58] sm:$0xff] %vm366_vm1, %v1640_v45 }
 0x49c   : > { %v969_v4 = vpop.xlane.xlu0 %968 }
 0x49d   : > { %v987_v13 = vsub.f32 %v1807_v10, %v969_v4 }
 0x49f   : > { %1676 = vst.msk [vmem:[%s2532_s30 + $0x70] sm:$0xff] %vm1661_vm4, %v987_v13 }
 0x4a0   : > { %v1158_v59 = vpop.permute.xlu0 %1157 }
 0x4a1   : > { %v1193_v21 = vmul.f32 %v1158_v59, %v1113_v44 }
 0x4a3   : > { %v1257_v31 = vadd.f32 %v3015_v53, %v1193_v21  ;;  %v2009_v53 = vld [vmem:[%s2243_s11 + $0x68] sm:$0xff] }
 0x4a4   : > { %v1286_v5 = vpop.permute.xlu0 %1285  ;;  %v1034_v22 = vmul.f32 %v2009_v53, %v3065_v6 }
 0x4a5   : > { %v1321_v55 = vmul.f32 %v1286_v5, %v1257_v31 }
 0x4a6   : > { %v1114_v19 = vadd.f32 %v3025_v3, %v1034_v22 }
 0x4a7   : > { %v1385_v37 = vadd.f32 %v3023_v50, %v1321_v55  ;;  %v1115_v50 = vadd.f32 %v3102_v43, %v1035_v61 }
 0x4a8   : > { %v1414_v16 = vpop.permute.xlu0 %1413 }
 0x4a9   : > { %v1449_v63 = vmul.f32 %v1414_v16, %v1385_v37 }
 0x4ab   : > { %v1513_v51 = vadd.f32 %v3030_v46, %v1449_v63 }
 0x4ac   : > { %v1542_v27 = vpop.permute.xlu0 %1541 }
 0x4ad   : > { %v1577_v60 = vmul.f32 %v1542_v27, %v1513_v51 }
 0x4ae   : > { %v972_v56 = vpop.xlane.xlu1 %971 }
 0x4af   : > { %v988_v7 = vsub.f32 %v1808_v39, %v972_v56  ;;  %v1641_v35 = vadd.f32 %v3092_v62, %v1577_v60 }
 0x4b0   : > { %v1162_v46 = vpop.permute.xlu0 %1161 }
 0x4b1   : > { %1677 = vst.msk [vmem:[%s2532_s30 + $0x78] sm:$0xff] %vm1661_vm4, %v988_v7  ;;  %v1195_v28 = vmul.f32 %v1162_v46, %v1115_v50 }
 0x4b2   : > { %1657 = vst.msk [vmem:[%s2648_s9 + $0x60] sm:$0xff] %vm366_vm1, %v1641_v35  ;;  %v1160_v54 = vpop.permute.xlu1 %1159 }
 0x4b3   : > { %v1194_v32 = vmul.f32 %v1160_v54, %v1114_v19  ;;  %v1259_v11 = vadd.f32 %v3111_v20, %v1195_v28 }
 0x4b4   : > { %v1290_v47 = vpop.permute.xlu0 %1289 }
 0x4b5   : > { %v1258_v6 = vadd.f32 %v3034_v24, %v1194_v32  ;;  %v1323_v2 = vmul.f32 %v1290_v47, %v1259_v11  ;;  %v2010_v24 = vld [vmem:[%s2243_s11 + $0x78] sm:$0xff] }
 0x4b6   : > { %v1288_v43 = vpop.permute.xlu1 %1287  ;;  %v1036_v18 = vmul.f32 %v2010_v24, %v3085_v38 }
 0x4b7   : > { %v1322_v0 = vmul.f32 %v1288_v43, %v1258_v6  ;;  %v1387_v62 = vadd.f32 %v3119_v15, %v1323_v2 }
 0x4b8   : > { %v1418_v3 = vpop.permute.xlu0 %1417  ;;  %v1116_v15 = vadd.f32 %v3121_v57, %v1036_v18 }
 0x4b9   : > { %v1386_v25 = vadd.f32 %v3043_v36, %v1322_v0  ;;  %v1451_v48 = vmul.f32 %v1418_v3, %v1387_v62 }
 0x4ba   : > { %v1416_v40 = vpop.permute.xlu1 %1415 }
 0x4bb   : > { %v1450_v23 = vmul.f32 %v1416_v40, %v1386_v25  ;;  %v1515_v49 = vadd.f32 %v3126_v33, %v1451_v48 }
 0x4bc   : > { %v1546_v20 = vpop.permute.xlu0 %1545 }
 0x4bd   : > { %v1514_v52 = vadd.f32 %v3047_v58, %v1450_v23  ;;  %v1579_v17 = vmul.f32 %v1546_v20, %v1515_v49 }
 0x4be   : > { %v1544_v9 = vpop.permute.xlu1 %1543 }
 0x4bf   : > { %v1578_v45 = vmul.f32 %v1544_v9, %v1514_v52 }
 0x4c0   : > { %v1610_v14 = vpop.permute.xlu0 %1609 }
 0x4c1   : > { %v1642_v36 = vadd.f32 %v3114_v42, %v1578_v45  ;;  %v1643_v10 = vadd.f32 %v1610_v14, %v1579_v17 }
 0x4c2   : > { %v1164_v4 = vpop.permute.xlu1 %1163 }
 0x4c3   : > { %1658 = vst.msk [vmem:[%s2648_s9 + $0x68] sm:$0xff] %vm366_vm1, %v1642_v36  ;;  %v1196_v33 = vmul.f32 %v1164_v4, %v1116_v15  ;;  %1659 = vst.msk [vmem:[%s2648_s9 + $0x70] sm:$0xff] %vm366_vm1, %v1643_v10 }
 0x4c5   : > { %v1260_v58 = vadd.f32 %v3128_v8, %v1196_v33 }
 0x4c6   : > { %v1292_v1 = vpop.permute.xlu1 %1291 }
 0x4c7   : > { %v1324_v34 = vmul.f32 %v1292_v1, %v1260_v58 }
 0x4c9   : > { %v1388_v38 = vadd.f32 %v3136_v41, %v1324_v34 }
 0x4ca   : > { %v1420_v13 = vpop.permute.xlu1 %1419 }
 0x4cb   : > { %v1452_v44 = vmul.f32 %v1420_v13, %v1388_v38 }
 0x4cd   : > { %v1516_v57 = vadd.f32 %v3139_v26, %v1452_v44 }
 0x4ce   : > { %v1548_v42 = vpop.permute.xlu1 %1547 }
 0x4cf   : > { %v1580_v59 = vmul.f32 %v1548_v42, %v1516_v57 }
 0x4d2   : > { %v1612_v21 = vpop.permute.xlu1 %1611 }
 0x4d3   : > { %v1644_v31 = vadd.f32 %v1612_v21, %v1580_v59 }
 0x4d5   : > { %1660 = vst.msk [vmem:[%s2648_s9 + $0x78] sm:$0xff] %vm366_vm1, %v1644_v31 }
 0x4d6 PF: > { %s18_s24 = sadd.s32 1, %s2017_s24  }
 0x4d7   : > { %p15_p4 = scmp.ge.s32.totalorder %s18_s24, 4  }
 0x4d9   :  { %17 = sbr.rel (!%p15_p4) target bundleno = 1 (0x1), region = 89 }

</bundles_post_ra>
